<compile_context>
chip_gen: v6e
topology: v6e:2x2x1
jax: 0.10.0
libtpu: 0.0.40
codegen_flags: <defaults>
</compile_context>

<pallas_src>
import jax
import jax.numpy as jnp
from jax.experimental import pallas as pl
from jax.experimental.pallas import tpu as pltpu


def _lrl_decoder_kernel(last_ref, h0_ref, c0_ref,
                        w31_ref, b31_ref, wih_ref, whh_ref, bg_ref,
                        w3_ref, b3_ref, out_ref, hs_ref):
    """Single program: the whole autoregressive decode.

    last_ref: (B, H)      last valid encoder state per sequence (bootstraps the chain)
    h0_ref:   (B, H)      initial LSTM hidden state
    c0_ref:   (B, H)      initial LSTM cell state
    w31_ref:  (H, I1)     fused lin_3∘lin_1 weight (w3 @ w1), bf16
    b31_ref:  (1, I1)     fused bias (b3 @ w1 + b1), f32
    wih_ref:  (I1, 4H)    LSTM W_ih^T, bf16, gate order i,f,g,o
    whh_ref:  (H, 4H)     LSTM W_hh^T, bf16
    bg_ref:   (1, 4H)     b_ih + b_hh, f32
    w3_ref:   (H, O)      lin_3 weight (transposed), bf16
    b3_ref:   (1, O)      lin_3 bias, f32
    out_ref:  (L*B, O)    time-major flat outputs (row t*B + b), unmasked
    hs_ref:   (L*B, H)    VMEM scratch holding h_t for the hoisted output projection
    """
    LB, O = out_ref.shape
    B, H = h0_ref.shape
    I1 = w31_ref.shape[1]
    L = LB // B

    # Weights (already bf16 from the wrapper) and biases hoisted out of the loop.
    w31 = w31_ref[...]
    wih = wih_ref[...]
    whh = whh_ref[...]
    w3 = w3_ref[...]
    mm = w31.dtype
    b31 = jnp.broadcast_to(b31_ref[...], (B, I1)).astype(jnp.float32)
    bg = jnp.broadcast_to(bg_ref[...], (B, 4 * H)).astype(jnp.float32)

    # prev feeds the folded lin_3∘lin_1; it equals `last` at t=0 and h_{t-1} afterwards.
    prev = last_ref[...].astype(jnp.float32)
    h = h0_ref[...].astype(jnp.float32)
    c = c0_ref[...].astype(jnp.float32)

    # L is small & static and the whole working set is a handful of vregs, so a
    # static Python loop (with static scratch slices) is used for the recurrence.
    for t in range(L):
        # Folded lin_3∘lin_1 on the recurrent path (dec_in eliminated from the carry).
        x1 = jnp.maximum(
            jnp.dot(prev.astype(mm), w31, preferred_element_type=jnp.float32) + b31,
            0.0)

        # Split gate matmul: h @ Whh has no dependence on x1 (overlaps the w31 matmul);
        # on v7x the two products accumulate in the MXU result buffer.
        gates = (jnp.dot(x1.astype(mm), wih, preferred_element_type=jnp.float32)
                 + jnp.dot(h.astype(mm), whh, preferred_element_type=jnp.float32)
                 + bg)

        # Per-gate activations (tanh only on the g slice), gate order i, f, g, o.
        i_g = jax.nn.sigmoid(gates[:, 0 * H:1 * H])
        f_g = jax.nn.sigmoid(gates[:, 1 * H:2 * H])
        g_g = jnp.tanh(gates[:, 2 * H:3 * H])
        o_g = jax.nn.sigmoid(gates[:, 3 * H:4 * H])

        c = f_g * c + i_g * g_g
        h = o_g * jnp.tanh(c)

        hs_ref[t * B:(t + 1) * B, :] = h   # static-slice store; projection hoisted
        prev = h

    # Hoisted output projection: one batched matmul over all L timesteps + one store.
    y = jnp.dot(hs_ref[...].astype(mm), w3, preferred_element_type=jnp.float32)
    out_ref[...] = (y + b3_ref[...].astype(jnp.float32)).astype(out_ref.dtype)


def lrl_decoder_forward(hid_r, inputs_lens, in_mask, init_in, hidden, params,
                        matmul_dtype=jnp.bfloat16):
    """hid_r: (B, L, H); inputs_lens: (B,) int32 (max == L); in_mask: (B, L) float;
    init_in: unused by the PyTorch forward (kept for signature parity);
    hidden: (h0, c0) each (num_layers=1, B, H).
    Returns (outputs (B, L, O), attention_weights=[])."""
    del init_in  # matches PyTorch: forward never reads init_in
    B, L, H = hid_r.shape
    O = params["w3"].shape[1]
    I1 = params["w1"].shape[1]

    # LastElementExtractor: per-row gather of the last valid timestep (XLA-level plumbing).
    idx = jnp.clip(inputs_lens.astype(jnp.int32) - 1, 0, L - 1)[:, None, None]
    last = jnp.take_along_axis(
        hid_r.astype(jnp.float32), jnp.broadcast_to(idx, (B, 1, H)), axis=1)[:, 0, :]

    h0 = hidden[0].reshape(B, H).astype(jnp.float32)
    c0 = hidden[1].reshape(B, H).astype(jnp.float32)

    # Parameter prep (once, outside the kernel).
    w1 = params["w1"].astype(jnp.float32)      # (O, I1)
    b1 = params["b1"].astype(jnp.float32)      # (1, I1)
    w3f = params["w3"].astype(jnp.float32)     # (H, O)
    b3 = params["b3"].astype(jnp.float32)      # (1, O)
    w31 = (w3f @ w1).astype(matmul_dtype)      # folded lin_3∘lin_1 weight (H, I1)
    b31 = b3 @ w1 + b1                         # folded bias (1, I1), f32
    wih = params["wih"].astype(matmul_dtype)   # (I1, 4H)
    whh = params["whh"].astype(matmul_dtype)   # (H, 4H)
    bg = params["bg"].astype(jnp.float32)      # (1, 4H)
    w3 = w3f.astype(matmul_dtype)              # (H, O)

    out_flat = pl.pallas_call(
        _lrl_decoder_kernel,
        out_shape=jax.ShapeDtypeStruct((L * B, O), jnp.float32),
        grid_spec=pltpu.PrefetchScalarGridSpec(
            num_scalar_prefetch=0,
            grid=(1,),   # the recurrence is inherently sequential; one program
            in_specs=[
                pl.BlockSpec((B, H), lambda i: (0, 0)),           # last
                pl.BlockSpec((B, H), lambda i: (0, 0)),           # h0
                pl.BlockSpec((B, H), lambda i: (0, 0)),           # c0
                pl.BlockSpec((H, I1), lambda i: (0, 0)),          # w31 (fused)
                pl.BlockSpec((1, I1), lambda i: (0, 0)),          # b31
                pl.BlockSpec((I1, 4 * H), lambda i: (0, 0)),      # wih
                pl.BlockSpec((H, 4 * H), lambda i: (0, 0)),       # whh
                pl.BlockSpec((1, 4 * H), lambda i: (0, 0)),       # bg
                pl.BlockSpec((H, O), lambda i: (0, 0)),           # w3
                pl.BlockSpec((1, O), lambda i: (0, 0)),           # b3
            ],
            out_specs=pl.BlockSpec((L * B, O), lambda i: (0, 0)),
            scratch_shapes=[pltpu.VMEM((L * B, H), jnp.float32)],
        ),
        compiler_params=pltpu.CompilerParams(
            dimension_semantics=("arbitrary",)),
    )(last, h0, c0, w31, b31, wih, whh, bg, w3, b3)

    # (L*B, O) -> (B, L, O), then mask_it once (outside the serial loop).
    outputs = jnp.transpose(out_flat.reshape(L, B, O), (1, 0, 2))
    outputs = jnp.where(in_mask[:, :, None] > 0, outputs, 0.0)
    return outputs, []                          # attention_weights is always []


def init_params(key, size_list):
    """Deterministic params, PyTorch-style U(-1/sqrt(fan_in), 1/sqrt(fan_in)) init.

    size_list = [O, I1, unused, H]:
      lin_1: O -> I1 (LinearPack), rnn: LSTM(I1, H), lin_3: H -> O.
    """
    O, I1, _, H = size_list
    ks = jax.random.split(key, 8)

    def u(k, shape, fan_in):
        b = 1.0 / float(fan_in) ** 0.5
        return jax.random.uniform(k, shape, jnp.float32, -b, b)

    w1 = u(ks[0], (O, I1), O)                 # lin_1 weight^T
    b1 = u(ks[1], (1, I1), O)
    wih = u(ks[2], (I1, 4 * H), H)            # LSTM W_ih^T (gate order i,f,g,o)
    whh = u(ks[3], (H, 4 * H), H)             # LSTM W_hh^T
    b_ih = u(ks[4], (4 * H,), H)
    b_hh = u(ks[5], (4 * H,), H)
    bg = (b_ih + b_hh)[None, :]
    w3 = u(ks[6], (H, O), H)                  # lin_3 weight^T
    b3 = u(ks[7], (1, O), H)
    return {"w1": w1, "b1": b1, "wih": wih, "whh": whh, "bg": bg, "w3": w3, "b3": b3}


def _reference_f32(hid_r, inputs_lens, in_mask, hidden, params):
    """Unfused, full-f32 reference mirroring the PyTorch forward literally."""
    B, L, H = hid_r.shape
    idx = jnp.clip(inputs_lens.astype(jnp.int32) - 1, 0, L - 1)[:, None, None]
    last = jnp.take_along_axis(hid_r, jnp.broadcast_to(idx, (B, 1, H)), axis=1)[:, 0, :]
    w1, b1 = params["w1"], params["b1"]
    wih, whh, bg = params["wih"], params["whh"], params["bg"]
    w3, b3 = params["w3"], params["b3"]
    h = hidden[0].reshape(B, H)
    c = hidden[1].reshape(B, H)
    dec_in = last @ w3 + b3
    outs = []
    for _ in range(L):
        x1 = jnp.maximum(dec_in @ w1 + b1, 0.0)
        gates = x1 @ wih + h @ whh + bg
        i_g = jax.nn.sigmoid(gates[:, 0 * H:1 * H])
        f_g = jax.nn.sigmoid(gates[:, 1 * H:2 * H])
        g_g = jnp.tanh(gates[:, 2 * H:3 * H])
        o_g = jax.nn.sigmoid(gates[:, 3 * H:4 * H])
        c = f_g * c + i_g * g_g
        h = o_g * jnp.tanh(c)
        dec_in = h @ w3 + b3
        outs.append(dec_in)
    out = jnp.stack(outs, axis=1)                      # (B, L, O)
    return out * in_mask[:, :, None]


def _reference_kernel_math(hid_r, inputs_lens, in_mask, hidden, params,
                           matmul_dtype=jnp.bfloat16):
    """Pure-JAX reference with the SAME math as the kernel (fused w31, split gates,
    bf16 operands / f32 accumulate, hoisted output projection)."""
    B, L, H = hid_r.shape
    md = matmul_dtype
    idx = jnp.clip(inputs_lens.astype(jnp.int32) - 1, 0, L - 1)[:, None, None]
    last = jnp.take_along_axis(hid_r, jnp.broadcast_to(idx, (B, 1, H)), axis=1)[:, 0, :]

    w1, b1 = params["w1"], params["b1"]
    w3, b3 = params["w3"], params["b3"]
    w31 = (w3 @ w1).astype(md)
    b31 = b3 @ w1 + b1
    wih = params["wih"].astype(md)
    whh = params["whh"].astype(md)
    bg = params["bg"]
    w3b = w3.astype(md)

    def dot(a, b):
        return jnp.dot(a.astype(md), b, preferred_element_type=jnp.float32)

    prev = last
    h = hidden[0].reshape(B, H)
    c = hidden[1].reshape(B, H)
    hs = []
    for _ in range(L):
        x1 = jnp.maximum(dot(prev, w31) + b31, 0.0)
        gates = dot(x1, wih) + dot(h, whh) + bg
        i_g = jax.nn.sigmoid(gates[:, 0 * H:1 * H])
        f_g = jax.nn.sigmoid(gates[:, 1 * H:2 * H])
        g_g = jnp.tanh(gates[:, 2 * H:3 * H])
        o_g = jax.nn.sigmoid(gates[:, 3 * H:4 * H])
        c = f_g * c + i_g * g_g
        h = o_g * jnp.tanh(c)
        hs.append(h)
        prev = h
    hs = jnp.concatenate(hs, axis=0)                   # (L*B, H)
    y = dot(hs, w3b) + b3                              # (L*B, O)
    out = jnp.transpose(y.reshape(L, B, -1), (1, 0, 2))
    return jnp.where(in_mask[:, :, None] > 0, out, 0.0)


if __name__ == "__main__":
    # size_list = [O, I1, unused, H]: lin_1 O->I1, LSTM(I1, H), lin_3 H->O.
    B, L = 2, 8
    size_list = [32, 32, 16, 32]
    O, I1, _, H = size_list

    key = jax.random.PRNGKey(0)
    kx, kp = jax.random.split(key)

    hid_r = jax.random.normal(kx, (B, L, H), jnp.float32)
    inputs_lens = jnp.array([L, 5], dtype=jnp.int32)                 # max(lens) == L
    in_mask = (jnp.arange(L)[None, :] < inputs_lens[:, None]).astype(jnp.float32)

    # hidden / dec_in_token as produced by LRLDecoder.inits (zeros); init_in unused.
    h0 = jnp.zeros((1, B, H), jnp.float32)
    c0 = jnp.zeros((1, B, H), jnp.float32)
    init_in = jnp.zeros((B, 1, O), jnp.float32)
    params = init_params(kp, size_list)

    out, attn = lrl_decoder_forward(hid_r, inputs_lens, in_mask, init_in, (h0, c0), params)
    out = jax.block_until_ready(out)

    assert out.shape == (B, L, O), out.shape
    assert attn == []

    # Tight check vs. a pure-JAX reference with identical (fused, bf16-operand) math.
    ref_same = _reference_kernel_math(hid_r, inputs_lens, in_mask, (h0, c0), params)
    assert jnp.allclose(out, ref_same, atol=2e-3, rtol=2e-3), "mismatch vs matched-math ref"

    # Loose check vs. the literal (unfused, f32) PyTorch-style forward — bounds the
    # drift introduced by the lin_3∘lin_1 fold and bf16 operands.
    ref_f32 = _reference_f32(hid_r, inputs_lens, in_mask, (h0, c0), params)
    assert jnp.allclose(out, ref_f32, atol=5e-2, rtol=0.0), "mismatch vs f32 reference"

    print("KERNEL_OK")
</pallas_src>

<mosaic_0001>
module attributes {stable_mosaic.version = 11 : i64} {
  func.func @_lrl_decoder_kernel(%arg0: i32, %arg1: memref<2x32xf32, #tpu.memory_space<vmem>>, %arg2: memref<2x32xf32, #tpu.memory_space<vmem>>, %arg3: memref<2x32xf32, #tpu.memory_space<vmem>>, %arg4: memref<32x32xbf16, #tpu.memory_space<vmem>>, %arg5: memref<1x32xf32, #tpu.memory_space<vmem>>, %arg6: memref<32x128xbf16, #tpu.memory_space<vmem>>, %arg7: memref<32x128xbf16, #tpu.memory_space<vmem>>, %arg8: memref<1x128xf32, #tpu.memory_space<vmem>>, %arg9: memref<32x32xbf16, #tpu.memory_space<vmem>>, %arg10: memref<1x32xf32, #tpu.memory_space<vmem>>, %arg11: memref<16x32xf32, #tpu.memory_space<vmem>>, %arg12: memref<16x32xf32, #tpu.memory_space<vmem>>) attributes {dimension_semantics = [#tpu.dimension_semantics<arbitrary>], iteration_bounds = array<i64: 1>, scalar_prefetch = 0 : i64, scratch_operands = 1 : i64, tpu.core_type = #tpu.core_type<tc>, window_params = [{pipeline_mode = #tpu.pipeline_mode<synchronous>, transform_indices = @transform_0, window_bounds = array<i64: 2, 32>}, {pipeline_mode = #tpu.pipeline_mode<synchronous>, transform_indices = @transform_1, window_bounds = array<i64: 2, 32>}, {pipeline_mode = #tpu.pipeline_mode<synchronous>, transform_indices = @transform_2, window_bounds = array<i64: 2, 32>}, {pipeline_mode = #tpu.pipeline_mode<synchronous>, transform_indices = @transform_3, window_bounds = array<i64: 32, 32>}, {pipeline_mode = #tpu.pipeline_mode<synchronous>, transform_indices = @transform_4, window_bounds = array<i64: 1, 32>}, {pipeline_mode = #tpu.pipeline_mode<synchronous>, transform_indices = @transform_5, window_bounds = array<i64: 32, 128>}, {pipeline_mode = #tpu.pipeline_mode<synchronous>, transform_indices = @transform_6, window_bounds = array<i64: 32, 128>}, {pipeline_mode = #tpu.pipeline_mode<synchronous>, transform_indices = @transform_7, window_bounds = array<i64: 1, 128>}, {pipeline_mode = #tpu.pipeline_mode<synchronous>, transform_indices = @transform_8, window_bounds = array<i64: 32, 32>}, {pipeline_mode = #tpu.pipeline_mode<synchronous>, transform_indices = @transform_9, window_bounds = array<i64: 1, 32>}, {pipeline_mode = #tpu.pipeline_mode<synchronous>, transform_indices = @transform_10, window_bounds = array<i64: 16, 32>}]} {
    %c0 = arith.constant 0 : index
    %c0_0 = arith.constant 0 : index
    %0 = vector.load %arg4[%c0, %c0_0] : memref<32x32xbf16, #tpu.memory_space<vmem>>, vector<32x32xbf16>
    %c0_1 = arith.constant 0 : index
    %c0_2 = arith.constant 0 : index
    %1 = vector.load %arg6[%c0_1, %c0_2] : memref<32x128xbf16, #tpu.memory_space<vmem>>, vector<32x128xbf16>
    %c0_3 = arith.constant 0 : index
    %c0_4 = arith.constant 0 : index
    %2 = vector.load %arg7[%c0_3, %c0_4] : memref<32x128xbf16, #tpu.memory_space<vmem>>, vector<32x128xbf16>
    %c0_5 = arith.constant 0 : index
    %c0_6 = arith.constant 0 : index
    %3 = vector.load %arg9[%c0_5, %c0_6] : memref<32x32xbf16, #tpu.memory_space<vmem>>, vector<32x32xbf16>
    %c0_7 = arith.constant 0 : index
    %c0_8 = arith.constant 0 : index
    %4 = vector.load %arg5[%c0_7, %c0_8] : memref<1x32xf32, #tpu.memory_space<vmem>>, vector<1x32xf32>
    %5 = vector.shape_cast %4 : vector<1x32xf32> to vector<1x32xf32>
    %6 = vector.broadcast %5 : vector<1x32xf32> to vector<2x32xf32>
    %c0_9 = arith.constant 0 : index
    %c0_10 = arith.constant 0 : index
    %7 = vector.load %arg8[%c0_9, %c0_10] : memref<1x128xf32, #tpu.memory_space<vmem>>, vector<1x128xf32>
    %8 = vector.shape_cast %7 : vector<1x128xf32> to vector<1x128xf32>
    %9 = vector.broadcast %8 : vector<1x128xf32> to vector<2x128xf32>
    %c0_11 = arith.constant 0 : index
    %c0_12 = arith.constant 0 : index
    %10 = vector.load %arg1[%c0_11, %c0_12] : memref<2x32xf32, #tpu.memory_space<vmem>>, vector<2x32xf32>
    %c0_13 = arith.constant 0 : index
    %c0_14 = arith.constant 0 : index
    %11 = vector.load %arg2[%c0_13, %c0_14] : memref<2x32xf32, #tpu.memory_space<vmem>>, vector<2x32xf32>
    %c0_15 = arith.constant 0 : index
    %c0_16 = arith.constant 0 : index
    %12 = vector.load %arg3[%c0_15, %c0_16] : memref<2x32xf32, #tpu.memory_space<vmem>>, vector<2x32xf32>
    %13 = arith.truncf %10 : vector<2x32xf32> to vector<2x32xbf16>
    %cst = arith.constant dense<0.000000e+00> : vector<2x32xf32>
    %14 = tpu.matmul %13, %0, %cst {dimension_numbers = #tpu.dot_dimension_numbers<[1], [0], [0], [1], [0, 0, 1, 1], [], []>} : vector<2x32xbf16>, vector<32x32xbf16>, vector<2x32xf32> -> vector<2x32xf32>
    %15 = arith.addf %14, %6 : vector<2x32xf32>
    %cst_17 = arith.constant 0.000000e+00 : f32
    %16 = vector.broadcast %cst_17 : f32 to vector<2x32xf32>
    %17 = arith.maximumf %15, %16 : vector<2x32xf32>
    %18 = arith.truncf %17 : vector<2x32xf32> to vector<2x32xbf16>
    %cst_18 = arith.constant dense<0.000000e+00> : vector<2x128xf32>
    %19 = tpu.matmul %18, %1, %cst_18 {dimension_numbers = #tpu.dot_dimension_numbers<[1], [0], [0], [1], [0, 0, 1, 1], [], []>} : vector<2x32xbf16>, vector<32x128xbf16>, vector<2x128xf32> -> vector<2x128xf32>
    %20 = arith.truncf %11 : vector<2x32xf32> to vector<2x32xbf16>
    %cst_19 = arith.constant dense<0.000000e+00> : vector<2x128xf32>
    %21 = tpu.matmul %20, %2, %cst_19 {dimension_numbers = #tpu.dot_dimension_numbers<[1], [0], [0], [1], [0, 0, 1, 1], [], []>} : vector<2x32xbf16>, vector<32x128xbf16>, vector<2x128xf32> -> vector<2x128xf32>
    %22 = arith.addf %19, %21 : vector<2x128xf32>
    %23 = arith.addf %22, %9 : vector<2x128xf32>
    %24 = vector.extract_strided_slice %23 {offsets = [0, 0], sizes = [2, 32], strides = [1, 1]} : vector<2x128xf32> to vector<2x32xf32>
    %25 = arith.negf %24 : vector<2x32xf32>
    %26 = math.exp %25 : vector<2x32xf32>
    %cst_20 = arith.constant 1.000000e+00 : f32
    %27 = vector.broadcast %cst_20 : f32 to vector<2x32xf32>
    %28 = arith.addf %27, %26 : vector<2x32xf32>
    %29 = arith.divf %27, %28 : vector<2x32xf32>
    %30 = vector.extract_strided_slice %23 {offsets = [0, 32], sizes = [2, 32], strides = [1, 1]} : vector<2x128xf32> to vector<2x32xf32>
    %31 = arith.negf %30 : vector<2x32xf32>
    %32 = math.exp %31 : vector<2x32xf32>
    %cst_21 = arith.constant 1.000000e+00 : f32
    %33 = vector.broadcast %cst_21 : f32 to vector<2x32xf32>
    %34 = arith.addf %33, %32 : vector<2x32xf32>
    %35 = arith.divf %33, %34 : vector<2x32xf32>
    %36 = vector.extract_strided_slice %23 {offsets = [0, 64], sizes = [2, 32], strides = [1, 1]} : vector<2x128xf32> to vector<2x32xf32>
    %37 = math.tanh %36 : vector<2x32xf32>
    %38 = vector.extract_strided_slice %23 {offsets = [0, 96], sizes = [2, 32], strides = [1, 1]} : vector<2x128xf32> to vector<2x32xf32>
    %39 = arith.negf %38 : vector<2x32xf32>
    %40 = math.exp %39 : vector<2x32xf32>
    %cst_22 = arith.constant 1.000000e+00 : f32
    %41 = vector.broadcast %cst_22 : f32 to vector<2x32xf32>
    %42 = arith.addf %41, %40 : vector<2x32xf32>
    %43 = arith.divf %41, %42 : vector<2x32xf32>
    %44 = arith.mulf %35, %12 : vector<2x32xf32>
    %45 = arith.mulf %29, %37 : vector<2x32xf32>
    %46 = arith.addf %44, %45 : vector<2x32xf32>
    %47 = math.tanh %46 : vector<2x32xf32>
    %48 = arith.mulf %43, %47 : vector<2x32xf32>
    %c0_23 = arith.constant 0 : index
    %c0_24 = arith.constant 0 : index
    %49 = vector.load %arg12[%c0_23, %c0_24] : memref<16x32xf32, #tpu.memory_space<vmem>>, vector<2x32xf32>
    tpu.vector_store %arg12[%c0_23, %c0_24], %48 {strides = array<i32>} : memref<16x32xf32, #tpu.memory_space<vmem>>, vector<2x32xf32>,
    %50 = arith.truncf %48 : vector<2x32xf32> to vector<2x32xbf16>
    %cst_25 = arith.constant dense<0.000000e+00> : vector<2x32xf32>
    %51 = tpu.matmul %50, %0, %cst_25 {dimension_numbers = #tpu.dot_dimension_numbers<[1], [0], [0], [1], [0, 0, 1, 1], [], []>} : vector<2x32xbf16>, vector<32x32xbf16>, vector<2x32xf32> -> vector<2x32xf32>
    %52 = arith.addf %51, %6 : vector<2x32xf32>
    %cst_26 = arith.constant 0.000000e+00 : f32
    %53 = vector.broadcast %cst_26 : f32 to vector<2x32xf32>
    %54 = arith.maximumf %52, %53 : vector<2x32xf32>
    %55 = arith.truncf %54 : vector<2x32xf32> to vector<2x32xbf16>
    %cst_27 = arith.constant dense<0.000000e+00> : vector<2x128xf32>
    %56 = tpu.matmul %55, %1, %cst_27 {dimension_numbers = #tpu.dot_dimension_numbers<[1], [0], [0], [1], [0, 0, 1, 1], [], []>} : vector<2x32xbf16>, vector<32x128xbf16>, vector<2x128xf32> -> vector<2x128xf32>
    %57 = arith.truncf %48 : vector<2x32xf32> to vector<2x32xbf16>
    %cst_28 = arith.constant dense<0.000000e+00> : vector<2x128xf32>
    %58 = tpu.matmul %57, %2, %cst_28 {dimension_numbers = #tpu.dot_dimension_numbers<[1], [0], [0], [1], [0, 0, 1, 1], [], []>} : vector<2x32xbf16>, vector<32x128xbf16>, vector<2x128xf32> -> vector<2x128xf32>
    %59 = arith.addf %56, %58 : vector<2x128xf32>
    %60 = arith.addf %59, %9 : vector<2x128xf32>
    %61 = vector.extract_strided_slice %60 {offsets = [0, 0], sizes = [2, 32], strides = [1, 1]} : vector<2x128xf32> to vector<2x32xf32>
    %62 = arith.negf %61 : vector<2x32xf32>
    %63 = math.exp %62 : vector<2x32xf32>
    %cst_29 = arith.constant 1.000000e+00 : f32
    %64 = vector.broadcast %cst_29 : f32 to vector<2x32xf32>
    %65 = arith.addf %64, %63 : vector<2x32xf32>
    %66 = arith.divf %64, %65 : vector<2x32xf32>
    %67 = vector.extract_strided_slice %60 {offsets = [0, 32], sizes = [2, 32], strides = [1, 1]} : vector<2x128xf32> to vector<2x32xf32>
    %68 = arith.negf %67 : vector<2x32xf32>
    %69 = math.exp %68 : vector<2x32xf32>
    %cst_30 = arith.constant 1.000000e+00 : f32
    %70 = vector.broadcast %cst_30 : f32 to vector<2x32xf32>
    %71 = arith.addf %70, %69 : vector<2x32xf32>
    %72 = arith.divf %70, %71 : vector<2x32xf32>
    %73 = vector.extract_strided_slice %60 {offsets = [0, 64], sizes = [2, 32], strides = [1, 1]} : vector<2x128xf32> to vector<2x32xf32>
    %74 = math.tanh %73 : vector<2x32xf32>
    %75 = vector.extract_strided_slice %60 {offsets = [0, 96], sizes = [2, 32], strides = [1, 1]} : vector<2x128xf32> to vector<2x32xf32>
    %76 = arith.negf %75 : vector<2x32xf32>
    %77 = math.exp %76 : vector<2x32xf32>
    %cst_31 = arith.constant 1.000000e+00 : f32
    %78 = vector.broadcast %cst_31 : f32 to vector<2x32xf32>
    %79 = arith.addf %78, %77 : vector<2x32xf32>
    %80 = arith.divf %78, %79 : vector<2x32xf32>
    %81 = arith.mulf %72, %46 : vector<2x32xf32>
    %82 = arith.mulf %66, %74 : vector<2x32xf32>
    %83 = arith.addf %81, %82 : vector<2x32xf32>
    %84 = math.tanh %83 : vector<2x32xf32>
    %85 = arith.mulf %80, %84 : vector<2x32xf32>
    %c2 = arith.constant 2 : index
    %c0_32 = arith.constant 0 : index
    %86 = vector.load %arg12[%c2, %c0_32] : memref<16x32xf32, #tpu.memory_space<vmem>>, vector<2x32xf32>
    tpu.vector_store %arg12[%c2, %c0_32], %85 {strides = array<i32>} : memref<16x32xf32, #tpu.memory_space<vmem>>, vector<2x32xf32>,
    %87 = arith.truncf %85 : vector<2x32xf32> to vector<2x32xbf16>
    %cst_33 = arith.constant dense<0.000000e+00> : vector<2x32xf32>
    %88 = tpu.matmul %87, %0, %cst_33 {dimension_numbers = #tpu.dot_dimension_numbers<[1], [0], [0], [1], [0, 0, 1, 1], [], []>} : vector<2x32xbf16>, vector<32x32xbf16>, vector<2x32xf32> -> vector<2x32xf32>
    %89 = arith.addf %88, %6 : vector<2x32xf32>
    %cst_34 = arith.constant 0.000000e+00 : f32
    %90 = vector.broadcast %cst_34 : f32 to vector<2x32xf32>
    %91 = arith.maximumf %89, %90 : vector<2x32xf32>
    %92 = arith.truncf %91 : vector<2x32xf32> to vector<2x32xbf16>
    %cst_35 = arith.constant dense<0.000000e+00> : vector<2x128xf32>
    %93 = tpu.matmul %92, %1, %cst_35 {dimension_numbers = #tpu.dot_dimension_numbers<[1], [0], [0], [1], [0, 0, 1, 1], [], []>} : vector<2x32xbf16>, vector<32x128xbf16>, vector<2x128xf32> -> vector<2x128xf32>
    %94 = arith.truncf %85 : vector<2x32xf32> to vector<2x32xbf16>
    %cst_36 = arith.constant dense<0.000000e+00> : vector<2x128xf32>
    %95 = tpu.matmul %94, %2, %cst_36 {dimension_numbers = #tpu.dot_dimension_numbers<[1], [0], [0], [1], [0, 0, 1, 1], [], []>} : vector<2x32xbf16>, vector<32x128xbf16>, vector<2x128xf32> -> vector<2x128xf32>
    %96 = arith.addf %93, %95 : vector<2x128xf32>
    %97 = arith.addf %96, %9 : vector<2x128xf32>
    %98 = vector.extract_strided_slice %97 {offsets = [0, 0], sizes = [2, 32], strides = [1, 1]} : vector<2x128xf32> to vector<2x32xf32>
    %99 = arith.negf %98 : vector<2x32xf32>
    %100 = math.exp %99 : vector<2x32xf32>
    %cst_37 = arith.constant 1.000000e+00 : f32
    %101 = vector.broadcast %cst_37 : f32 to vector<2x32xf32>
    %102 = arith.addf %101, %100 : vector<2x32xf32>
    %103 = arith.divf %101, %102 : vector<2x32xf32>
    %104 = vector.extract_strided_slice %97 {offsets = [0, 32], sizes = [2, 32], strides = [1, 1]} : vector<2x128xf32> to vector<2x32xf32>
    %105 = arith.negf %104 : vector<2x32xf32>
    %106 = math.exp %105 : vector<2x32xf32>
    %cst_38 = arith.constant 1.000000e+00 : f32
    %107 = vector.broadcast %cst_38 : f32 to vector<2x32xf32>
    %108 = arith.addf %107, %106 : vector<2x32xf32>
    %109 = arith.divf %107, %108 : vector<2x32xf32>
    %110 = vector.extract_strided_slice %97 {offsets = [0, 64], sizes = [2, 32], strides = [1, 1]} : vector<2x128xf32> to vector<2x32xf32>
    %111 = math.tanh %110 : vector<2x32xf32>
    %112 = vector.extract_strided_slice %97 {offsets = [0, 96], sizes = [2, 32], strides = [1, 1]} : vector<2x128xf32> to vector<2x32xf32>
    %113 = arith.negf %112 : vector<2x32xf32>
    %114 = math.exp %113 : vector<2x32xf32>
    %cst_39 = arith.constant 1.000000e+00 : f32
    %115 = vector.broadcast %cst_39 : f32 to vector<2x32xf32>
    %116 = arith.addf %115, %114 : vector<2x32xf32>
    %117 = arith.divf %115, %116 : vector<2x32xf32>
    %118 = arith.mulf %109, %83 : vector<2x32xf32>
    %119 = arith.mulf %103, %111 : vector<2x32xf32>
    %120 = arith.addf %118, %119 : vector<2x32xf32>
    %121 = math.tanh %120 : vector<2x32xf32>
    %122 = arith.mulf %117, %121 : vector<2x32xf32>
    %c4 = arith.constant 4 : index
    %c0_40 = arith.constant 0 : index
    %123 = vector.load %arg12[%c4, %c0_40] : memref<16x32xf32, #tpu.memory_space<vmem>>, vector<2x32xf32>
    tpu.vector_store %arg12[%c4, %c0_40], %122 {strides = array<i32>} : memref<16x32xf32, #tpu.memory_space<vmem>>, vector<2x32xf32>,
    %124 = arith.truncf %122 : vector<2x32xf32> to vector<2x32xbf16>
    %cst_41 = arith.constant dense<0.000000e+00> : vector<2x32xf32>
    %125 = tpu.matmul %124, %0, %cst_41 {dimension_numbers = #tpu.dot_dimension_numbers<[1], [0], [0], [1], [0, 0, 1, 1], [], []>} : vector<2x32xbf16>, vector<32x32xbf16>, vector<2x32xf32> -> vector<2x32xf32>
    %126 = arith.addf %125, %6 : vector<2x32xf32>
    %cst_42 = arith.constant 0.000000e+00 : f32
    %127 = vector.broadcast %cst_42 : f32 to vector<2x32xf32>
    %128 = arith.maximumf %126, %127 : vector<2x32xf32>
    %129 = arith.truncf %128 : vector<2x32xf32> to vector<2x32xbf16>
    %cst_43 = arith.constant dense<0.000000e+00> : vector<2x128xf32>
    %130 = tpu.matmul %129, %1, %cst_43 {dimension_numbers = #tpu.dot_dimension_numbers<[1], [0], [0], [1], [0, 0, 1, 1], [], []>} : vector<2x32xbf16>, vector<32x128xbf16>, vector<2x128xf32> -> vector<2x128xf32>
    %131 = arith.truncf %122 : vector<2x32xf32> to vector<2x32xbf16>
    %cst_44 = arith.constant dense<0.000000e+00> : vector<2x128xf32>
    %132 = tpu.matmul %131, %2, %cst_44 {dimension_numbers = #tpu.dot_dimension_numbers<[1], [0], [0], [1], [0, 0, 1, 1], [], []>} : vector<2x32xbf16>, vector<32x128xbf16>, vector<2x128xf32> -> vector<2x128xf32>
    %133 = arith.addf %130, %132 : vector<2x128xf32>
    %134 = arith.addf %133, %9 : vector<2x128xf32>
    %135 = vector.extract_strided_slice %134 {offsets = [0, 0], sizes = [2, 32], strides = [1, 1]} : vector<2x128xf32> to vector<2x32xf32>
    %136 = arith.negf %135 : vector<2x32xf32>
    %137 = math.exp %136 : vector<2x32xf32>
    %cst_45 = arith.constant 1.000000e+00 : f32
    %138 = vector.broadcast %cst_45 : f32 to vector<2x32xf32>
    %139 = arith.addf %138, %137 : vector<2x32xf32>
    %140 = arith.divf %138, %139 : vector<2x32xf32>
    %141 = vector.extract_strided_slice %134 {offsets = [0, 32], sizes = [2, 32], strides = [1, 1]} : vector<2x128xf32> to vector<2x32xf32>
    %142 = arith.negf %141 : vector<2x32xf32>
    %143 = math.exp %142 : vector<2x32xf32>
    %cst_46 = arith.constant 1.000000e+00 : f32
    %144 = vector.broadcast %cst_46 : f32 to vector<2x32xf32>
    %145 = arith.addf %144, %143 : vector<2x32xf32>
    %146 = arith.divf %144, %145 : vector<2x32xf32>
    %147 = vector.extract_strided_slice %134 {offsets = [0, 64], sizes = [2, 32], strides = [1, 1]} : vector<2x128xf32> to vector<2x32xf32>
    %148 = math.tanh %147 : vector<2x32xf32>
    %149 = vector.extract_strided_slice %134 {offsets = [0, 96], sizes = [2, 32], strides = [1, 1]} : vector<2x128xf32> to vector<2x32xf32>
    %150 = arith.negf %149 : vector<2x32xf32>
    %151 = math.exp %150 : vector<2x32xf32>
    %cst_47 = arith.constant 1.000000e+00 : f32
    %152 = vector.broadcast %cst_47 : f32 to vector<2x32xf32>
    %153 = arith.addf %152, %151 : vector<2x32xf32>
    %154 = arith.divf %152, %153 : vector<2x32xf32>
    %155 = arith.mulf %146, %120 : vector<2x32xf32>
    %156 = arith.mulf %140, %148 : vector<2x32xf32>
    %157 = arith.addf %155, %156 : vector<2x32xf32>
    %158 = math.tanh %157 : vector<2x32xf32>
    %159 = arith.mulf %154, %158 : vector<2x32xf32>
    %c6 = arith.constant 6 : index
    %c0_48 = arith.constant 0 : index
    %160 = vector.load %arg12[%c6, %c0_48] : memref<16x32xf32, #tpu.memory_space<vmem>>, vector<2x32xf32>
    tpu.vector_store %arg12[%c6, %c0_48], %159 {strides = array<i32>} : memref<16x32xf32, #tpu.memory_space<vmem>>, vector<2x32xf32>,
    %161 = arith.truncf %159 : vector<2x32xf32> to vector<2x32xbf16>
    %cst_49 = arith.constant dense<0.000000e+00> : vector<2x32xf32>
    %162 = tpu.matmul %161, %0, %cst_49 {dimension_numbers = #tpu.dot_dimension_numbers<[1], [0], [0], [1], [0, 0, 1, 1], [], []>} : vector<2x32xbf16>, vector<32x32xbf16>, vector<2x32xf32> -> vector<2x32xf32>
    %163 = arith.addf %162, %6 : vector<2x32xf32>
    %cst_50 = arith.constant 0.000000e+00 : f32
    %164 = vector.broadcast %cst_50 : f32 to vector<2x32xf32>
    %165 = arith.maximumf %163, %164 : vector<2x32xf32>
    %166 = arith.truncf %165 : vector<2x32xf32> to vector<2x32xbf16>
    %cst_51 = arith.constant dense<0.000000e+00> : vector<2x128xf32>
    %167 = tpu.matmul %166, %1, %cst_51 {dimension_numbers = #tpu.dot_dimension_numbers<[1], [0], [0], [1], [0, 0, 1, 1], [], []>} : vector<2x32xbf16>, vector<32x128xbf16>, vector<2x128xf32> -> vector<2x128xf32>
    %168 = arith.truncf %159 : vector<2x32xf32> to vector<2x32xbf16>
    %cst_52 = arith.constant dense<0.000000e+00> : vector<2x128xf32>
    %169 = tpu.matmul %168, %2, %cst_52 {dimension_numbers = #tpu.dot_dimension_numbers<[1], [0], [0], [1], [0, 0, 1, 1], [], []>} : vector<2x32xbf16>, vector<32x128xbf16>, vector<2x128xf32> -> vector<2x128xf32>
    %170 = arith.addf %167, %169 : vector<2x128xf32>
    %171 = arith.addf %170, %9 : vector<2x128xf32>
    %172 = vector.extract_strided_slice %171 {offsets = [0, 0], sizes = [2, 32], strides = [1, 1]} : vector<2x128xf32> to vector<2x32xf32>
    %173 = arith.negf %172 : vector<2x32xf32>
    %174 = math.exp %173 : vector<2x32xf32>
    %cst_53 = arith.constant 1.000000e+00 : f32
    %175 = vector.broadcast %cst_53 : f32 to vector<2x32xf32>
    %176 = arith.addf %175, %174 : vector<2x32xf32>
    %177 = arith.divf %175, %176 : vector<2x32xf32>
    %178 = vector.extract_strided_slice %171 {offsets = [0, 32], sizes = [2, 32], strides = [1, 1]} : vector<2x128xf32> to vector<2x32xf32>
    %179 = arith.negf %178 : vector<2x32xf32>
    %180 = math.exp %179 : vector<2x32xf32>
    %cst_54 = arith.constant 1.000000e+00 : f32
    %181 = vector.broadcast %cst_54 : f32 to vector<2x32xf32>
    %182 = arith.addf %181, %180 : vector<2x32xf32>
    %183 = arith.divf %181, %182 : vector<2x32xf32>
    %184 = vector.extract_strided_slice %171 {offsets = [0, 64], sizes = [2, 32], strides = [1, 1]} : vector<2x128xf32> to vector<2x32xf32>
    %185 = math.tanh %184 : vector<2x32xf32>
    %186 = vector.extract_strided_slice %171 {offsets = [0, 96], sizes = [2, 32], strides = [1, 1]} : vector<2x128xf32> to vector<2x32xf32>
    %187 = arith.negf %186 : vector<2x32xf32>
    %188 = math.exp %187 : vector<2x32xf32>
    %cst_55 = arith.constant 1.000000e+00 : f32
    %189 = vector.broadcast %cst_55 : f32 to vector<2x32xf32>
    %190 = arith.addf %189, %188 : vector<2x32xf32>
    %191 = arith.divf %189, %190 : vector<2x32xf32>
    %192 = arith.mulf %183, %157 : vector<2x32xf32>
    %193 = arith.mulf %177, %185 : vector<2x32xf32>
    %194 = arith.addf %192, %193 : vector<2x32xf32>
    %195 = math.tanh %194 : vector<2x32xf32>
    %196 = arith.mulf %191, %195 : vector<2x32xf32>
    %c8 = arith.constant 8 : index
    %c0_56 = arith.constant 0 : index
    %197 = vector.load %arg12[%c8, %c0_56] : memref<16x32xf32, #tpu.memory_space<vmem>>, vector<2x32xf32>
    tpu.vector_store %arg12[%c8, %c0_56], %196 {strides = array<i32>} : memref<16x32xf32, #tpu.memory_space<vmem>>, vector<2x32xf32>,
    %198 = arith.truncf %196 : vector<2x32xf32> to vector<2x32xbf16>
    %cst_57 = arith.constant dense<0.000000e+00> : vector<2x32xf32>
    %199 = tpu.matmul %198, %0, %cst_57 {dimension_numbers = #tpu.dot_dimension_numbers<[1], [0], [0], [1], [0, 0, 1, 1], [], []>} : vector<2x32xbf16>, vector<32x32xbf16>, vector<2x32xf32> -> vector<2x32xf32>
    %200 = arith.addf %199, %6 : vector<2x32xf32>
    %cst_58 = arith.constant 0.000000e+00 : f32
    %201 = vector.broadcast %cst_58 : f32 to vector<2x32xf32>
    %202 = arith.maximumf %200, %201 : vector<2x32xf32>
    %203 = arith.truncf %202 : vector<2x32xf32> to vector<2x32xbf16>
    %cst_59 = arith.constant dense<0.000000e+00> : vector<2x128xf32>
    %204 = tpu.matmul %203, %1, %cst_59 {dimension_numbers = #tpu.dot_dimension_numbers<[1], [0], [0], [1], [0, 0, 1, 1], [], []>} : vector<2x32xbf16>, vector<32x128xbf16>, vector<2x128xf32> -> vector<2x128xf32>
    %205 = arith.truncf %196 : vector<2x32xf32> to vector<2x32xbf16>
    %cst_60 = arith.constant dense<0.000000e+00> : vector<2x128xf32>
    %206 = tpu.matmul %205, %2, %cst_60 {dimension_numbers = #tpu.dot_dimension_numbers<[1], [0], [0], [1], [0, 0, 1, 1], [], []>} : vector<2x32xbf16>, vector<32x128xbf16>, vector<2x128xf32> -> vector<2x128xf32>
    %207 = arith.addf %204, %206 : vector<2x128xf32>
    %208 = arith.addf %207, %9 : vector<2x128xf32>
    %209 = vector.extract_strided_slice %208 {offsets = [0, 0], sizes = [2, 32], strides = [1, 1]} : vector<2x128xf32> to vector<2x32xf32>
    %210 = arith.negf %209 : vector<2x32xf32>
    %211 = math.exp %210 : vector<2x32xf32>
    %cst_61 = arith.constant 1.000000e+00 : f32
    %212 = vector.broadcast %cst_61 : f32 to vector<2x32xf32>
    %213 = arith.addf %212, %211 : vector<2x32xf32>
    %214 = arith.divf %212, %213 : vector<2x32xf32>
    %215 = vector.extract_strided_slice %208 {offsets = [0, 32], sizes = [2, 32], strides = [1, 1]} : vector<2x128xf32> to vector<2x32xf32>
    %216 = arith.negf %215 : vector<2x32xf32>
    %217 = math.exp %216 : vector<2x32xf32>
    %cst_62 = arith.constant 1.000000e+00 : f32
    %218 = vector.broadcast %cst_62 : f32 to vector<2x32xf32>
    %219 = arith.addf %218, %217 : vector<2x32xf32>
    %220 = arith.divf %218, %219 : vector<2x32xf32>
    %221 = vector.extract_strided_slice %208 {offsets = [0, 64], sizes = [2, 32], strides = [1, 1]} : vector<2x128xf32> to vector<2x32xf32>
    %222 = math.tanh %221 : vector<2x32xf32>
    %223 = vector.extract_strided_slice %208 {offsets = [0, 96], sizes = [2, 32], strides = [1, 1]} : vector<2x128xf32> to vector<2x32xf32>
    %224 = arith.negf %223 : vector<2x32xf32>
    %225 = math.exp %224 : vector<2x32xf32>
    %cst_63 = arith.constant 1.000000e+00 : f32
    %226 = vector.broadcast %cst_63 : f32 to vector<2x32xf32>
    %227 = arith.addf %226, %225 : vector<2x32xf32>
    %228 = arith.divf %226, %227 : vector<2x32xf32>
    %229 = arith.mulf %220, %194 : vector<2x32xf32>
    %230 = arith.mulf %214, %222 : vector<2x32xf32>
    %231 = arith.addf %229, %230 : vector<2x32xf32>
    %232 = math.tanh %231 : vector<2x32xf32>
    %233 = arith.mulf %228, %232 : vector<2x32xf32>
    %c10 = arith.constant 10 : index
    %c0_64 = arith.constant 0 : index
    %234 = vector.load %arg12[%c10, %c0_64] : memref<16x32xf32, #tpu.memory_space<vmem>>, vector<2x32xf32>
    tpu.vector_store %arg12[%c10, %c0_64], %233 {strides = array<i32>} : memref<16x32xf32, #tpu.memory_space<vmem>>, vector<2x32xf32>,
    %235 = arith.truncf %233 : vector<2x32xf32> to vector<2x32xbf16>
    %cst_65 = arith.constant dense<0.000000e+00> : vector<2x32xf32>
    %236 = tpu.matmul %235, %0, %cst_65 {dimension_numbers = #tpu.dot_dimension_numbers<[1], [0], [0], [1], [0, 0, 1, 1], [], []>} : vector<2x32xbf16>, vector<32x32xbf16>, vector<2x32xf32> -> vector<2x32xf32>
    %237 = arith.addf %236, %6 : vector<2x32xf32>
    %cst_66 = arith.constant 0.000000e+00 : f32
    %238 = vector.broadcast %cst_66 : f32 to vector<2x32xf32>
    %239 = arith.maximumf %237, %238 : vector<2x32xf32>
    %240 = arith.truncf %239 : vector<2x32xf32> to vector<2x32xbf16>
    %cst_67 = arith.constant dense<0.000000e+00> : vector<2x128xf32>
    %241 = tpu.matmul %240, %1, %cst_67 {dimension_numbers = #tpu.dot_dimension_numbers<[1], [0], [0], [1], [0, 0, 1, 1], [], []>} : vector<2x32xbf16>, vector<32x128xbf16>, vector<2x128xf32> -> vector<2x128xf32>
    %242 = arith.truncf %233 : vector<2x32xf32> to vector<2x32xbf16>
    %cst_68 = arith.constant dense<0.000000e+00> : vector<2x128xf32>
    %243 = tpu.matmul %242, %2, %cst_68 {dimension_numbers = #tpu.dot_dimension_numbers<[1], [0], [0], [1], [0, 0, 1, 1], [], []>} : vector<2x32xbf16>, vector<32x128xbf16>, vector<2x128xf32> -> vector<2x128xf32>
    %244 = arith.addf %241, %243 : vector<2x128xf32>
    %245 = arith.addf %244, %9 : vector<2x128xf32>
    %246 = vector.extract_strided_slice %245 {offsets = [0, 0], sizes = [2, 32], strides = [1, 1]} : vector<2x128xf32> to vector<2x32xf32>
    %247 = arith.negf %246 : vector<2x32xf32>
    %248 = math.exp %247 : vector<2x32xf32>
    %cst_69 = arith.constant 1.000000e+00 : f32
    %249 = vector.broadcast %cst_69 : f32 to vector<2x32xf32>
    %250 = arith.addf %249, %248 : vector<2x32xf32>
    %251 = arith.divf %249, %250 : vector<2x32xf32>
    %252 = vector.extract_strided_slice %245 {offsets = [0, 32], sizes = [2, 32], strides = [1, 1]} : vector<2x128xf32> to vector<2x32xf32>
    %253 = arith.negf %252 : vector<2x32xf32>
    %254 = math.exp %253 : vector<2x32xf32>
    %cst_70 = arith.constant 1.000000e+00 : f32
    %255 = vector.broadcast %cst_70 : f32 to vector<2x32xf32>
    %256 = arith.addf %255, %254 : vector<2x32xf32>
    %257 = arith.divf %255, %256 : vector<2x32xf32>
    %258 = vector.extract_strided_slice %245 {offsets = [0, 64], sizes = [2, 32], strides = [1, 1]} : vector<2x128xf32> to vector<2x32xf32>
    %259 = math.tanh %258 : vector<2x32xf32>
    %260 = vector.extract_strided_slice %245 {offsets = [0, 96], sizes = [2, 32], strides = [1, 1]} : vector<2x128xf32> to vector<2x32xf32>
    %261 = arith.negf %260 : vector<2x32xf32>
    %262 = math.exp %261 : vector<2x32xf32>
    %cst_71 = arith.constant 1.000000e+00 : f32
    %263 = vector.broadcast %cst_71 : f32 to vector<2x32xf32>
    %264 = arith.addf %263, %262 : vector<2x32xf32>
    %265 = arith.divf %263, %264 : vector<2x32xf32>
    %266 = arith.mulf %257, %231 : vector<2x32xf32>
    %267 = arith.mulf %251, %259 : vector<2x32xf32>
    %268 = arith.addf %266, %267 : vector<2x32xf32>
    %269 = math.tanh %268 : vector<2x32xf32>
    %270 = arith.mulf %265, %269 : vector<2x32xf32>
    %c12 = arith.constant 12 : index
    %c0_72 = arith.constant 0 : index
    %271 = vector.load %arg12[%c12, %c0_72] : memref<16x32xf32, #tpu.memory_space<vmem>>, vector<2x32xf32>
    tpu.vector_store %arg12[%c12, %c0_72], %270 {strides = array<i32>} : memref<16x32xf32, #tpu.memory_space<vmem>>, vector<2x32xf32>,
    %272 = arith.truncf %270 : vector<2x32xf32> to vector<2x32xbf16>
    %cst_73 = arith.constant dense<0.000000e+00> : vector<2x32xf32>
    %273 = tpu.matmul %272, %0, %cst_73 {dimension_numbers = #tpu.dot_dimension_numbers<[1], [0], [0], [1], [0, 0, 1, 1], [], []>} : vector<2x32xbf16>, vector<32x32xbf16>, vector<2x32xf32> -> vector<2x32xf32>
    %274 = arith.addf %273, %6 : vector<2x32xf32>
    %cst_74 = arith.constant 0.000000e+00 : f32
    %275 = vector.broadcast %cst_74 : f32 to vector<2x32xf32>
    %276 = arith.maximumf %274, %275 : vector<2x32xf32>
    %277 = arith.truncf %276 : vector<2x32xf32> to vector<2x32xbf16>
    %cst_75 = arith.constant dense<0.000000e+00> : vector<2x128xf32>
    %278 = tpu.matmul %277, %1, %cst_75 {dimension_numbers = #tpu.dot_dimension_numbers<[1], [0], [0], [1], [0, 0, 1, 1], [], []>} : vector<2x32xbf16>, vector<32x128xbf16>, vector<2x128xf32> -> vector<2x128xf32>
    %279 = arith.truncf %270 : vector<2x32xf32> to vector<2x32xbf16>
    %cst_76 = arith.constant dense<0.000000e+00> : vector<2x128xf32>
    %280 = tpu.matmul %279, %2, %cst_76 {dimension_numbers = #tpu.dot_dimension_numbers<[1], [0], [0], [1], [0, 0, 1, 1], [], []>} : vector<2x32xbf16>, vector<32x128xbf16>, vector<2x128xf32> -> vector<2x128xf32>
    %281 = arith.addf %278, %280 : vector<2x128xf32>
    %282 = arith.addf %281, %9 : vector<2x128xf32>
    %283 = vector.extract_strided_slice %282 {offsets = [0, 0], sizes = [2, 32], strides = [1, 1]} : vector<2x128xf32> to vector<2x32xf32>
    %284 = arith.negf %283 : vector<2x32xf32>
    %285 = math.exp %284 : vector<2x32xf32>
    %cst_77 = arith.constant 1.000000e+00 : f32
    %286 = vector.broadcast %cst_77 : f32 to vector<2x32xf32>
    %287 = arith.addf %286, %285 : vector<2x32xf32>
    %288 = arith.divf %286, %287 : vector<2x32xf32>
    %289 = vector.extract_strided_slice %282 {offsets = [0, 32], sizes = [2, 32], strides = [1, 1]} : vector<2x128xf32> to vector<2x32xf32>
    %290 = arith.negf %289 : vector<2x32xf32>
    %291 = math.exp %290 : vector<2x32xf32>
    %cst_78 = arith.constant 1.000000e+00 : f32
    %292 = vector.broadcast %cst_78 : f32 to vector<2x32xf32>
    %293 = arith.addf %292, %291 : vector<2x32xf32>
    %294 = arith.divf %292, %293 : vector<2x32xf32>
    %295 = vector.extract_strided_slice %282 {offsets = [0, 64], sizes = [2, 32], strides = [1, 1]} : vector<2x128xf32> to vector<2x32xf32>
    %296 = math.tanh %295 : vector<2x32xf32>
    %297 = vector.extract_strided_slice %282 {offsets = [0, 96], sizes = [2, 32], strides = [1, 1]} : vector<2x128xf32> to vector<2x32xf32>
    %298 = arith.negf %297 : vector<2x32xf32>
    %299 = math.exp %298 : vector<2x32xf32>
    %cst_79 = arith.constant 1.000000e+00 : f32
    %300 = vector.broadcast %cst_79 : f32 to vector<2x32xf32>
    %301 = arith.addf %300, %299 : vector<2x32xf32>
    %302 = arith.divf %300, %301 : vector<2x32xf32>
    %303 = arith.mulf %294, %268 : vector<2x32xf32>
    %304 = arith.mulf %288, %296 : vector<2x32xf32>
    %305 = arith.addf %303, %304 : vector<2x32xf32>
    %306 = math.tanh %305 : vector<2x32xf32>
    %307 = arith.mulf %302, %306 : vector<2x32xf32>
    %c14 = arith.constant 14 : index
    %c0_80 = arith.constant 0 : index
    %308 = vector.load %arg12[%c14, %c0_80] : memref<16x32xf32, #tpu.memory_space<vmem>>, vector<2x32xf32>
    tpu.vector_store %arg12[%c14, %c0_80], %307 {strides = array<i32>} : memref<16x32xf32, #tpu.memory_space<vmem>>, vector<2x32xf32>,
    %c0_81 = arith.constant 0 : index
    %c0_82 = arith.constant 0 : index
    %309 = vector.load %arg12[%c0_81, %c0_82] : memref<16x32xf32, #tpu.memory_space<vmem>>, vector<16x32xf32>
    %310 = arith.truncf %309 : vector<16x32xf32> to vector<16x32xbf16>
    %cst_83 = arith.constant dense<0.000000e+00> : vector<16x32xf32>
    %311 = tpu.matmul %310, %3, %cst_83 {dimension_numbers = #tpu.dot_dimension_numbers<[1], [0], [0], [1], [0, 0, 1, 1], [], []>} : vector<16x32xbf16>, vector<32x32xbf16>, vector<16x32xf32> -> vector<16x32xf32>
    %c0_84 = arith.constant 0 : index
    %c0_85 = arith.constant 0 : index
    %312 = vector.load %arg10[%c0_84, %c0_85] : memref<1x32xf32, #tpu.memory_space<vmem>>, vector<1x32xf32>
    %313 = vector.broadcast %312 : vector<1x32xf32> to vector<16x32xf32>
    %314 = arith.addf %311, %313 : vector<16x32xf32>
    %c0_86 = arith.constant 0 : index
    %c0_87 = arith.constant 0 : index
    %315 = vector.load %arg11[%c0_86, %c0_87] : memref<16x32xf32, #tpu.memory_space<vmem>>, vector<16x32xf32>
    tpu.vector_store %arg11[%c0_86, %c0_87], %314 {strides = array<i32>} : memref<16x32xf32, #tpu.memory_space<vmem>>, vector<16x32xf32>,
    return
  }
  func.func @transform_0(%arg0: i32) -> (i32, i32) {
    %c0_i32 = arith.constant 0 : i32
    %c0_i32_0 = arith.constant 0 : i32
    %c0_i32_1 = arith.constant 0 : i32
    return %c0_i32, %c0_i32_0 : i32, i32
  }
  func.func @transform_1(%arg0: i32) -> (i32, i32) {
    %c0_i32 = arith.constant 0 : i32
    %c0_i32_0 = arith.constant 0 : i32
    %c0_i32_1 = arith.constant 0 : i32
    return %c0_i32, %c0_i32_0 : i32, i32
  }
  func.func @transform_2(%arg0: i32) -> (i32, i32) {
    %c0_i32 = arith.constant 0 : i32
    %c0_i32_0 = arith.constant 0 : i32
    %c0_i32_1 = arith.constant 0 : i32
    return %c0_i32, %c0_i32_0 : i32, i32
  }
  func.func @transform_3(%arg0: i32) -> (i32, i32) {
    %c0_i32 = arith.constant 0 : i32
    %c0_i32_0 = arith.constant 0 : i32
    %c0_i32_1 = arith.constant 0 : i32
    return %c0_i32, %c0_i32_0 : i32, i32
  }
  func.func @transform_4(%arg0: i32) -> (i32, i32) {
    %c0_i32 = arith.constant 0 : i32
    %c0_i32_0 = arith.constant 0 : i32
    %c0_i32_1 = arith.constant 0 : i32
    return %c0_i32, %c0_i32_0 : i32, i32
  }
  func.func @transform_5(%arg0: i32) -> (i32, i32) {
    %c0_i32 = arith.constant 0 : i32
    %c0_i32_0 = arith.constant 0 : i32
    %c0_i32_1 = arith.constant 0 : i32
    return %c0_i32, %c0_i32_0 : i32, i32
  }
  func.func @transform_6(%arg0: i32) -> (i32, i32) {
    %c0_i32 = arith.constant 0 : i32
    %c0_i32_0 = arith.constant 0 : i32
    %c0_i32_1 = arith.constant 0 : i32
    return %c0_i32, %c0_i32_0 : i32, i32
  }
  func.func @transform_7(%arg0: i32) -> (i32, i32) {
    %c0_i32 = arith.constant 0 : i32
    %c0_i32_0 = arith.constant 0 : i32
    %c0_i32_1 = arith.constant 0 : i32
    return %c0_i32, %c0_i32_0 : i32, i32
  }
  func.func @transform_8(%arg0: i32) -> (i32, i32) {
    %c0_i32 = arith.constant 0 : i32
    %c0_i32_0 = arith.constant 0 : i32
    %c0_i32_1 = arith.constant 0 : i32
    return %c0_i32, %c0_i32_0 : i32, i32
  }
  func.func @transform_9(%arg0: i32) -> (i32, i32) {
    %c0_i32 = arith.constant 0 : i32
    %c0_i32_0 = arith.constant 0 : i32
    %c0_i32_1 = arith.constant 0 : i32
    return %c0_i32, %c0_i32_0 : i32, i32
  }
  func.func @transform_10(%arg0: i32) -> (i32, i32) {
    %c0_i32 = arith.constant 0 : i32
    %c0_i32_0 = arith.constant 0 : i32
    %c0_i32_1 = arith.constant 0 : i32
    return %c0_i32, %c0_i32_0 : i32, i32
  }
}

</mosaic_0001>

<bundles_post_ra>
// kernel: tpu_custom_call.1
= control target key start
LH: loop header
LB: loop body
LE: loop exit
PB: predicated region body
PF: predicated region fallthrough
CT: control target
= control target key end

     0   :  { %15 = vsyncpa [#allocation4], 0  ;;  %s2529_s0 = inlined_call_operand.hbm [shape: f32[2,32], index: 0, kind: input, shape index: {}]   ;;  %s2530_s1 = inlined_call_operand.hbm [shape: f32[2,32], index: 1, kind: input, shape index: {}]   ;;  %s2531_s2 = inlined_call_operand.vmem [shape: f32[2,32], index: 2, kind: input, shape index: {}]   ;;  %s2532_s3 = inlined_call_operand.hbm [shape: bf16[32,32], index: 3, kind: input, shape index: {}]   ;;  %s2533_s4 = inlined_call_operand.vmem [shape: f32[1,32], index: 4, kind: input, shape index: {}]   ;;  %s2534_s5 = inlined_call_operand.hbm [shape: bf16[32,128], index: 5, kind: input, shape index: {}]   ;;  %s2535_s6 = inlined_call_operand.hbm [shape: bf16[32,128], index: 6, kind: input, shape index: {}]   ;;  %s2536_s7 = inlined_call_operand.vmem [shape: f32[1,128], index: 7, kind: input, shape index: {}]   ;;  %s2537_s8 = inlined_call_operand.hbm [shape: bf16[32,32], index: 8, kind: input, shape index: {}]   ;;  %s2538_s9 = inlined_call_operand.vmem [shape: f32[1,32], index: 9, kind: input, shape index: {}]   ;;  %s2539_s10 = inlined_call_operand.hbm [shape: f32[16,32], index: 10, kind: output, shape index: {}]  }
   0x1   :  { %16 = vsyncpa [#allocation7], 0 }
   0x2   :  { %17 = vsyncpa [#allocation10], 0 }
   0x3   :  { %18 = vsyncpa [#allocation13], 0 }
   0x4   :  { %19 = vsyncpa [#allocation5], 0  ;;  %s2130_s13 = smov [#allocation6]  }
   0x5   :  { %s36_s14 = sshll.u32 %s2130_s13, 4  ;;  %s37_s14 = int_to_ptr.vmem [resolvable:$true] %s36_s14 }
   0x6   :  { %s1988_s15 = scalar_lea.vmem %s37_s14, 32  ;;  %p1993_p1 = scmp.lt.s32.totalorder %s37_s14, %s37_s14 }
   0x7   :  { %p1989_p0 = scmp.ne.s32.totalorder %s37_s14, %s1988_s15  ;;  %p1994_p2 = scmp.lt.s32.totalorder %s1988_s15, %s1988_s15 }
   0x9   :  { %p1995_p3 = por %p1994_p2, %p1993_p1 }
   0xb   :  { %p1996_p4 = pnand %p1995_p3, %p1989_p0 }
   0xd   :  { %1999 = shalt.err (!%p1996_p4)
}
   0xe   :  { %39 = dma.hbm_to_vmem [thread:$0]  %s2530_s1, 32, %s37_s14, [#allocation7]  }
   0xf   :  { %s2131_s18 = smov [#allocation9]   ;;  %s2132_s20 = smov [#allocation3]  }
  0x10   :  { %s61_s19 = sshll.u32 %s2131_s18, 4  ;;  %s26_s21 = sshll.u32 %s2132_s20, 4  ;;  %s62_s19 = int_to_ptr.vmem [resolvable:$true] %s61_s19  ;;  %s27_s21 = int_to_ptr.vmem [resolvable:$true] %s26_s21 }
  0x11   :  { %s2008_s22 = scalar_lea.vmem %s62_s19, 256  ;;  %p2013_p6 = scmp.lt.s32.totalorder %s62_s19, %s62_s19 }
  0x12   :  { %p2009_p5 = scmp.ne.s32.totalorder %s62_s19, %s2008_s22  ;;  %p2014_p7 = scmp.lt.s32.totalorder %s2008_s22, %s2008_s22 }
  0x14   :  { %p2015_p8 = por %p2014_p7, %p2013_p6 }
  0x16   :  { %p2016_p9 = pnand %p2015_p8, %p2009_p5 }
  0x18   :  { %2019 = shalt.err (!%p2016_p9)
}
  0x19   :  { %s2133_s23 = smov 64   ;;  %s2134_s24 = smov 4  }
  0x1a   :  { %67 = dma.hbm_to_vmem [thread:$0]  %s2534_s5, 256, %s62_s19, [#allocation10], %s2133_s23, %s2133_s23, %s2134_s24  }
  0x1b   :  { %s2028_s1 = scalar_lea.vmem %s27_s21, 32  ;;  %p2033_p11 = scmp.lt.s32.totalorder %s27_s21, %s27_s21 }
  0x1c   :  { %p2029_p10 = scmp.ne.s32.totalorder %s27_s21, %s2028_s1  ;;  %p2034_p12 = scmp.lt.s32.totalorder %s2028_s1, %s2028_s1 }
  0x1e   :  { %p2035_p13 = por %p2034_p12, %p2033_p11 }
  0x20   :  { %p2036_p0 = pnand %p2035_p13, %p2029_p10 }
  0x22   :  { %2039 = shalt.err (!%p2036_p0)
}
  0x23   :  { %29 = dma.hbm_to_vmem [thread:$0]  %s2529_s0, 32, %s27_s21, [#allocation4]  }
  0x24   :  { %s2135_s29 = smov [#allocation8]   ;;  %s2136_s11 = smov [#allocation11]  }
  0x25   :  { %s47_s30 = sshll.u32 %s2135_s29, 4  ;;  %s73_s12 = sshll.u32 %s2136_s11, 4  ;;  %s48_s30 = int_to_ptr.vmem [resolvable:$true] %s47_s30  ;;  %s74_s12 = int_to_ptr.vmem [resolvable:$true] %s73_s12 }
  0x26   :  { %s2048_s13 = scalar_lea.vmem %s48_s30, 256  ;;  %p2053_p2 = scmp.lt.s32.totalorder %s48_s30, %s48_s30 }
  0x27   :  { %p2049_p1 = scmp.ne.s32.totalorder %s48_s30, %s2048_s13  ;;  %p2054_p3 = scmp.lt.s32.totalorder %s2048_s13, %s2048_s13 }
  0x29   :  { %p2055_p4 = por %p2054_p3, %p2053_p2 }
  0x2b   :  { %p2056_p5 = pnand %p2055_p4, %p2049_p1 }
  0x2d   :  { %2059 = shalt.err (!%p2056_p5)
}
  0x2e   :  { %53 = dma.hbm_to_vmem [thread:$0]  %s2532_s3, 256, %s48_s30, [#allocation7], %s2133_s23, %s2133_s23, %s2134_s24  }
  0x2f   :  { %s2068_s0 = scalar_lea.vmem %s74_s12, 256  ;;  %p2073_p7 = scmp.lt.s32.totalorder %s74_s12, %s74_s12 }
  0x30   :  { %p2069_p6 = scmp.ne.s32.totalorder %s74_s12, %s2068_s0  ;;  %p2074_p8 = scmp.lt.s32.totalorder %s2068_s0, %s2068_s0 }
  0x32   :  { %p2075_p9 = por %p2074_p8, %p2073_p7 }
  0x34   :  { %p2076_p10 = pnand %p2075_p9, %p2069_p6 }
  0x36   :  { %2079 = shalt.err (!%p2076_p10)
}
  0x37   :  { %79 = dma.hbm_to_vmem [thread:$0]  %s2535_s6, 256, %s74_s12, [#allocation10], %s2133_s23, %s2133_s23, %s2134_s24  }
  0x38   :  { %s2137_s17 = smov [#allocation12]  }
  0x39   :  { %s87_s18 = sshll.u32 %s2137_s17, 4  ;;  %s88_s18 = int_to_ptr.vmem [resolvable:$true] %s87_s18 }
  0x3a   :  { %s2088_s19 = scalar_lea.vmem %s88_s18, 256  ;;  %p2093_p12 = scmp.lt.s32.totalorder %s88_s18, %s88_s18 }
  0x3b   :  { %p2089_p11 = scmp.ne.s32.totalorder %s88_s18, %s2088_s19  ;;  %p2094_p13 = scmp.lt.s32.totalorder %s2088_s19, %s2088_s19 }
  0x3d   :  { %p2095_p0 = por %p2094_p13, %p2093_p12 }
  0x3f   :  { %p2096_p1 = pnand %p2095_p0, %p2089_p11 }
  0x41   :  { %2099 = shalt.err (!%p2096_p1)
}
  0x42   :  { %93 = dma.hbm_to_vmem [thread:$0]  %s2537_s8, 256, %s88_s18, [#allocation13], %s2133_s23, %s2133_s23, %s2134_s24  }
  0x43   :  { %2120 = dma.done.wait [#allocation4], 32  }
  0x44   :  { %2121 = vsyncadd [#allocation4], 4294967264 }
  0x45   :  { %2122 = dma.done.wait [#allocation7], 288  }
  0x46   :  { %2123 = vsyncadd [#allocation7], 4294967008 }
  0x47   :  { %2124 = dma.done.wait [#allocation10], 512  }
  0x48   :  { %2125 = vsyncadd [#allocation10], 4294966784 }
  0x49   :  { %2126 = dma.done.wait [#allocation13], 256  }
  0x4a   :  { %2127 = vsyncadd [#allocation13], 4294967040  ;;  %v2138_v0 = vmov 0.0   ;;  %vm2139_vm0 = vmmov 0   ;;  %v2235_v1 = vld [vmem:[#allocation8 + $0x8] sm:$0xff]   ;;  %v2237_v2 = vld [vmem:[#allocation8] sm:$0xff]  }
  0x4b   :  { %1694 = vmatprep.subr.bf16.mxu0 %v2138_v0  ;;  %1698 = vmatprep.mubr.msk.bf16.mxu0 %vm2139_vm0, %v2138_v0  ;;  %v145_v3 = vld [vmem:[#allocation3] sm:$0x3]  ;;  %v2241_v4 = vld [vmem:[#allocation11 + $0x8] sm:$0xff]   ;;  %vm161_vm1 = vcmask 261120   ;;  %v2244_v6 = vld [vmem:[#allocation11] sm:$0xff]   ;;  %s2140_s25 = smov 32  }
  0x4c   :  { %1702 = vmatprep.subr.bf16.mxu1 %v2138_v0  ;;  %1706 = vmatprep.mubr.msk.bf16.mxu1 %vm2139_vm0, %v2138_v0  ;;  %v148_v5 = vpack.c.bf16 %v145_v3, %v145_v3  ;;  %v2246_v7 = vld [vmem:[#allocation9 + $0x8] sm:$0xff]   ;;  %v2259_v10 = vld [vmem:[#allocation9] sm:$0xff]   ;;  %v2272_v11 = vld [vmem:[%s2533_s4] ss:$0 sm:$0xff]  ;;  %vm351_vm2 = vcmask 254976  }
  0x4d   :  { %1695 = vmatpush3.bf16.msra.mxu0 %v2235_v1  ;;  %1703 = vmatpush3.bf16.msra.mxu1 %v2241_v4  ;;  %v146_v8 = vld [vmem:[#allocation6] sm:$0x3]  ;;  %v2285_v23 = vld [vmem:[%s2536_s7] ss:$0 sm:$0xff] }
  0x4e   :  { %1696 = vmatprep.subr.bf16.mxu0 %v2138_v0  ;;  %1704 = vmatprep.subr.bf16.mxu1 %v2138_v0  ;;  %v207_v9 = vpack.c.bf16 %v146_v8, %v146_v8  ;;  %v147_v31 = vld [vmem:[%s2531_s2] sm:$0x3] }
  0x51   :  { %1697 = vmatpush3.bf16.msra.mxu0 %v2237_v2  ;;  %1705 = vmatpush3.bf16.msra.mxu1 %v2244_v6 }
  0x52   :  { %1710 = vmatprep.subr.bf16.mxu0 %v2138_v0  ;;  %1718 = vmatprep.subr.bf16.mxu1 %v2138_v0 }
  0x54   :  { %1699 = vmatmul.mubr.msk.bf16.vlgmr.msra.gmra.mxu0 %vm161_vm1, %v148_v5  ;;  %1707 = vmatmul.mubr.msk.bf16.vlgmr.msra.gmra.mxu1 %vm161_vm1, %v207_v9 }
  0x55   :  { %1711 = vmatpush3.bf16.msra.mxu0 %v2246_v7  ;;  %1714 = vmatprep.mubr.msk.bf16.mxu0 %vm2139_vm0, %v2138_v0 }
  0x56   :  { %1712 = vmatprep.subr.bf16.mxu0 %v2138_v0  ;;  %1719 = vmatpush3.bf16.msra.mxu1 %v2235_v1 }
  0x57   :  { %1722 = vmatprep.mubr.msk.bf16.mxu1 %vm2139_vm0, %v2138_v0  ;;  %1720 = vmatprep.subr.bf16.mxu1 %v2138_v0 }
  0x59   :  { %1713 = vmatpush3.bf16.msra.mxu0 %v2259_v10 }
  0x5a   :  { %1726 = vmatprep.subr.bf16.mxu0 %v2138_v0  ;;  %1721 = vmatpush3.bf16.msra.mxu1 %v2237_v2 }
  0x5b   :  { %1734 = vmatprep.subr.bf16.mxu1 %v2138_v0 }
 0x114   :  { %v199_v12 = vpop.f32.mrf.mxu0  ;;  %v257_v19 = vpop.f32.mrf.mxu1 }
 0x115   :  { %v200_v13 = vadd.f32 %v2272_v11, %v199_v12 }
 0x116   :  { %v1700_v14 = vpop.f32.mrf.mxu0  ;;  %v1708_v20 = vpop.f32.mrf.mxu1 }
 0x117   :  { %v205_v15 = vmax.f32 %v200_v13, 0.0 }
 0x118   :  { %v202_v16 = vpop.f32.mrf.mxu0  ;;  %v260_v21 = vpop.f32.mrf.mxu1 }
 0x119   :  { %v206_v17 = vpack.c.bf16 %v205_v15, %v205_v15 }
 0x11a   :  { %v1701_v18 = vpop.f32.mrf.mxu0  ;;  %v1709_v22 = vpop.f32.mrf.mxu1 }
 0x11b   :  { %1715 = vmatmul.mubr.msk.bf16.vlgmr.msra.gmra.mxu0 %vm161_vm1, %v206_v17 }
 0x11c   :  { %1727 = vmatpush3.bf16.msra.mxu0 %v2241_v4  ;;  %1730 = vmatprep.mubr.msk.bf16.mxu0 %vm2139_vm0, %v2138_v0 }
 0x11d   :  { %1728 = vmatprep.subr.bf16.mxu0 %v2138_v0 }
 0x120   :  { %1729 = vmatpush3.bf16.msra.mxu0 %v2244_v6 }
 0x121   :  { %1742 = vmatprep.subr.bf16.mxu0 %v2138_v0 }
 0x1db   :  { %v312_v24 = vpop.f32.mrf.mxu0 }
 0x1dc   :  { %v313_v25 = vadd.f32 %v312_v24, %v257_v19 }
 0x1dd   :  { %v1716_v26 = vpop.f32.mrf.mxu0 }
 0x1de   :  { %v318_v27 = vadd.f32 %v2285_v23, %v313_v25 }
 0x1df   :  { %v315_v28 = vpop.f32.mrf.mxu0 }
 0x1e0   :  { %1916 = vtanh.f32 %v318_v27  ;;  %v1586_v32 = vmul.f32 -1.442695, %v318_v27 }
 0x1e1   :  { %v1717_v29 = vpop.f32.mrf.mxu0 }
 0x1e2   :  { %1918 = vpow2.f32 %v1586_v32 }
 0x1ed   :  { %v1917_v30 = vpop.eup %1916 }
 0x1ee   :  { %332 = vrot.lane.b32.xlu0 %v1917_v30, %s2133_s23 }
 0x1ef   :  { %v1919_v33 = vpop.eup %1918 }
 0x1f0   :  { %v322_v34 = vadd.f32 1.0, %v1919_v33 }
 0x1f2   :  { %327 = vrot.lane.b32.xlu0 %v147_v31, %s2140_s25  ;;  %1920 = vrcp.f32 %v322_v34 }
 0x1ff   :  { %v1921_v35 = vpop.eup %1920 }
 0x260   :  { %v333_v36 = vpop.permute.xlu0 %332 }
 0x261   :  { %v335_v37 = vmul.f32 %v1921_v35, %v333_v36 }
 0x263   :  { %337 = vrot.lane.b32.xlu1 %v335_v37, %s2140_s25 }
 0x264   :  { %v328_v38 = vpop.permute.xlu0 %327 }
 0x265   :  { %v330_v39 = vmul.f32 %v1921_v35, %v328_v38 }
 0x2d5   :  { %v338_v40 = vpop.permute.xlu1 %337 }
 0x2d6   :  { %v340_v41 = vadd.f32 %v338_v40, %v330_v39 }
 0x2d8   :  { %1922 = vtanh.f32 %v340_v41 }
 0x2e5   :  { %v1923_v42 = vpop.eup %1922 }
 0x2e6   :  { %343 = vrot.lane.b32.xlu1 %v1923_v42, %s2133_s23 }
 0x358   :  { %v344_v43 = vpop.permute.xlu1 %343 }
 0x359   :  { %v2295_v44 = vmul.f32 %v1921_v35, %v344_v43 }
 0x35b   :  { %v353_v45 = vpack.c.bf16 %v2295_v44, %v2295_v44 }
 0x35d   :  { %355 = vrot.lane.b32.xlu0 %v353_v45, %s2140_s25 }
 0x3cf   :  { %v356_v46 = vpop.permute.xlu0 %355 }
 0x3d0   :  { %1723 = vmatmul.mubr.msk.bf16.vlgmr.msra.gmra.mxu1 %vm161_vm1, %v356_v46  ;;  %1731 = vmatmul.mubr.msk.bf16.vlgmr.msra.gmra.mxu0 %vm161_vm1, %v356_v46 }
 0x3d1   :  { %1735 = vmatpush3.bf16.msra.mxu1 %v2246_v7  ;;  %1738 = vmatprep.mubr.msk.bf16.mxu1 %vm2139_vm0, %v2138_v0 }
 0x3d2   :  { %1736 = vmatprep.subr.bf16.mxu1 %v2138_v0  ;;  %1743 = vmatpush3.bf16.msra.mxu0 %v2235_v1 }
 0x3d3   :  { %1744 = vmatprep.subr.bf16.mxu0 %v2138_v0  ;;  %1746 = vmatprep.mubr.msk.bf16.mxu0 %vm2139_vm0, %v2138_v0 }
 0x3d5   :  { %1737 = vmatpush3.bf16.msra.mxu1 %v2259_v10 }
 0x3d6   :  { %1750 = vmatprep.subr.bf16.mxu1 %v2138_v0  ;;  %1745 = vmatpush3.bf16.msra.mxu0 %v2237_v2 }
 0x3d7   :  { %1758 = vmatprep.subr.bf16.mxu0 %v2138_v0 }
 0x490   :  { %v394_v47 = vpop.f32.mrf.mxu1  ;;  %v436_v48 = vpop.f32.mrf.mxu0 }
 0x491   :  { %v395_v49 = vadd.f32 %v2272_v11, %v394_v47 }
 0x492   :  { %v1724_v50 = vpop.f32.mrf.mxu1  ;;  %v1732_v51 = vpop.f32.mrf.mxu0 }
 0x493   :  { %v400_v52 = vmax.f32 %v395_v49, 0.0 }
 0x494   :  { %v397_v53 = vpop.f32.mrf.mxu1  ;;  %v439_v54 = vpop.f32.mrf.mxu0 }
 0x495   :  { %v401_v55 = vpack.c.bf16 %v400_v52, %v400_v52 }
 0x496   :  { %v1725_v56 = vpop.f32.mrf.mxu1  ;;  %v1733_v57 = vpop.f32.mrf.mxu0 }
 0x497   :  { %1739 = vmatmul.mubr.msk.bf16.vlgmr.msra.gmra.mxu1 %vm161_vm1, %v401_v55 }
 0x498   :  { %1751 = vmatpush3.bf16.msra.mxu1 %v2241_v4  ;;  %1754 = vmatprep.mubr.msk.bf16.mxu1 %vm2139_vm0, %v2138_v0 }
 0x499   :  { %1752 = vmatprep.subr.bf16.mxu1 %v2138_v0 }
 0x49c   :  { %1753 = vmatpush3.bf16.msra.mxu1 %v2244_v6 }
 0x49d   :  { %1766 = vmatprep.subr.bf16.mxu1 %v2138_v0 }
 0x557   :  { %v479_v58 = vpop.f32.mrf.mxu1 }
 0x558   :  { %v480_v59 = vadd.f32 %v479_v58, %v436_v48 }
 0x559   :  { %v1740_v60 = vpop.f32.mrf.mxu1 }
 0x55a   :  { %v485_v61 = vadd.f32 %v2285_v23, %v480_v59 }
 0x55b   :  { %v482_v62 = vpop.f32.mrf.mxu1 }
 0x55c   :  { %1924 = vtanh.f32 %v485_v61  ;;  %v1590_v5 = vmul.f32 -1.442695, %v485_v61 }
 0x55d   :  { %v1741_v63 = vpop.f32.mrf.mxu1 }
 0x55e   :  { %1926 = vpow2.f32 %v1590_v5 }
 0x569   :  { %v1925_v3 = vpop.eup %1924 }
 0x56a   :  { %495 = vrot.lane.b32.xlu1 %v1925_v3, %s2133_s23 }
 0x56b   :  { %v1927_v8 = vpop.eup %1926 }
 0x56c   :  { %v489_v9 = vadd.f32 1.0, %v1927_v8 }
 0x56e   :  { %1928 = vrcp.f32 %v489_v9 }
 0x57b   :  { %v1929_v12 = vpop.eup %1928 }
 0x57c   :  { %v493_v15 = vmul.f32 %v1929_v12, %v340_v41 }
 0x5dc   :  { %v496_v13 = vpop.permute.xlu1 %495 }
 0x5dd   :  { %v498_v14 = vmul.f32 %v1929_v12, %v496_v13 }
 0x5df   :  { %500 = vrot.lane.b32.xlu0 %v498_v14, %s2140_s25 }
 0x651   :  { %v501_v16 = vpop.permute.xlu0 %500 }
 0x652   :  { %v503_v17 = vadd.f32 %v501_v16, %v493_v15 }
 0x654   :  { %1930 = vtanh.f32 %v503_v17 }
 0x661   :  { %v1931_v18 = vpop.eup %1930 }
 0x662   :  { %506 = vrot.lane.b32.xlu1 %v1931_v18, %s2133_s23 }
 0x6d4   :  { %v507_v19 = vpop.permute.xlu1 %506 }
 0x6d5   :  { %v2326_v20 = vmul.f32 %v1929_v12, %v507_v19 }
 0x6d7   :  { %v515_v21 = vpack.c.bf16 %v2326_v20, %v2326_v20 }
 0x6d9   :  { %517 = vrot.lane.b32.xlu0 %v515_v21, %s2140_s25 }
 0x74b   :  { %v518_v22 = vpop.permute.xlu0 %517 }
 0x74c   :  { %1747 = vmatmul.mubr.msk.bf16.vlgmr.msra.gmra.mxu0 %vm161_vm1, %v518_v22  ;;  %1755 = vmatmul.mubr.msk.bf16.vlgmr.msra.gmra.mxu1 %vm161_vm1, %v518_v22 }
 0x74d   :  { %1759 = vmatpush3.bf16.msra.mxu0 %v2246_v7  ;;  %1762 = vmatprep.mubr.msk.bf16.mxu0 %vm2139_vm0, %v2138_v0 }
 0x74e   :  { %1760 = vmatprep.subr.bf16.mxu0 %v2138_v0  ;;  %1767 = vmatpush3.bf16.msra.mxu1 %v2235_v1 }
 0x74f   :  { %1768 = vmatprep.subr.bf16.mxu1 %v2138_v0  ;;  %1770 = vmatprep.mubr.msk.bf16.mxu1 %vm2139_vm0, %v2138_v0 }
 0x751   :  { %1761 = vmatpush3.bf16.msra.mxu0 %v2259_v10 }
 0x752   :  { %1774 = vmatprep.subr.bf16.mxu0 %v2138_v0  ;;  %1769 = vmatpush3.bf16.msra.mxu1 %v2237_v2 }
 0x753   :  { %1782 = vmatprep.subr.bf16.mxu1 %v2138_v0 }
 0x80c   :  { %v556_v24 = vpop.f32.mrf.mxu0  ;;  %v598_v25 = vpop.f32.mrf.mxu1 }
 0x80d   :  { %v557_v26 = vadd.f32 %v2272_v11, %v556_v24 }
 0x80e   :  { %v1748_v27 = vpop.f32.mrf.mxu0  ;;  %v1756_v28 = vpop.f32.mrf.mxu1 }
 0x80f   :  { %v562_v29 = vmax.f32 %v557_v26, 0.0 }
 0x810   :  { %v559_v30 = vpop.f32.mrf.mxu0  ;;  %v601_v31 = vpop.f32.mrf.mxu1 }
 0x811   :  { %v563_v32 = vpack.c.bf16 %v562_v29, %v562_v29 }
 0x812   :  { %v1749_v33 = vpop.f32.mrf.mxu0  ;;  %v1757_v34 = vpop.f32.mrf.mxu1 }
 0x813   :  { %1763 = vmatmul.mubr.msk.bf16.vlgmr.msra.gmra.mxu0 %vm161_vm1, %v563_v32 }
 0x814   :  { %1775 = vmatpush3.bf16.msra.mxu0 %v2241_v4  ;;  %1778 = vmatprep.mubr.msk.bf16.mxu0 %vm2139_vm0, %v2138_v0 }
 0x815   :  { %1776 = vmatprep.subr.bf16.mxu0 %v2138_v0 }
 0x818   :  { %1777 = vmatpush3.bf16.msra.mxu0 %v2244_v6 }
 0x819   :  { %1790 = vmatprep.subr.bf16.mxu0 %v2138_v0 }
 0x8d3   :  { %v641_v35 = vpop.f32.mrf.mxu0 }
 0x8d4   :  { %v642_v36 = vadd.f32 %v641_v35, %v598_v25 }
 0x8d5   :  { %v1764_v37 = vpop.f32.mrf.mxu0 }
 0x8d6   :  { %v647_v38 = vadd.f32 %v2285_v23, %v642_v36 }
 0x8d7   :  { %v644_v39 = vpop.f32.mrf.mxu0 }
 0x8d8   :  { %1932 = vtanh.f32 %v647_v38  ;;  %v1594_v42 = vmul.f32 -1.442695, %v647_v38 }
 0x8d9   :  { %v1765_v40 = vpop.f32.mrf.mxu0 }
 0x8da   :  { %1934 = vpow2.f32 %v1594_v42 }
 0x8e5   :  { %v1933_v41 = vpop.eup %1932 }
 0x8e6   :  { %657 = vrot.lane.b32.xlu1 %v1933_v41, %s2133_s23 }
 0x8e7   :  { %v1935_v43 = vpop.eup %1934 }
 0x8e8   :  { %v651_v45 = vadd.f32 1.0, %v1935_v43 }
 0x8ea   :  { %1936 = vrcp.f32 %v651_v45 }
 0x8f7   :  { %v1937_v46 = vpop.eup %1936 }
 0x8f8   :  { %v655_v49 = vmul.f32 %v1937_v46, %v503_v17 }
 0x958   :  { %v658_v47 = vpop.permute.xlu1 %657 }
 0x959   :  { %v660_v48 = vmul.f32 %v1937_v46, %v658_v47 }
 0x95b   :  { %662 = vrot.lane.b32.xlu0 %v660_v48, %s2140_s25 }
 0x9cd   :  { %v663_v50 = vpop.permute.xlu0 %662 }
 0x9ce   :  { %v665_v51 = vadd.f32 %v663_v50, %v655_v49 }
 0x9d0   :  { %1938 = vtanh.f32 %v665_v51 }
 0x9dd   :  { %v1939_v52 = vpop.eup %1938 }
 0x9de   :  { %668 = vrot.lane.b32.xlu1 %v1939_v52, %s2133_s23 }
 0xa50   :  { %v669_v53 = vpop.permute.xlu1 %668 }
 0xa51   :  { %v2357_v54 = vmul.f32 %v1937_v46, %v669_v53 }
 0xa53   :  { %v677_v55 = vpack.c.bf16 %v2357_v54, %v2357_v54 }
 0xa55   :  { %679 = vrot.lane.b32.xlu0 %v677_v55, %s2140_s25 }
 0xac7   :  { %v680_v56 = vpop.permute.xlu0 %679 }
 0xac8   :  { %1771 = vmatmul.mubr.msk.bf16.vlgmr.msra.gmra.mxu1 %vm161_vm1, %v680_v56  ;;  %1779 = vmatmul.mubr.msk.bf16.vlgmr.msra.gmra.mxu0 %vm161_vm1, %v680_v56 }
 0xac9   :  { %1783 = vmatpush3.bf16.msra.mxu1 %v2246_v7  ;;  %1786 = vmatprep.mubr.msk.bf16.mxu1 %vm2139_vm0, %v2138_v0 }
 0xaca   :  { %1784 = vmatprep.subr.bf16.mxu1 %v2138_v0  ;;  %1791 = vmatpush3.bf16.msra.mxu0 %v2235_v1 }
 0xacb   :  { %1792 = vmatprep.subr.bf16.mxu0 %v2138_v0  ;;  %1794 = vmatprep.mubr.msk.bf16.mxu0 %vm2139_vm0, %v2138_v0 }
 0xacd   :  { %1785 = vmatpush3.bf16.msra.mxu1 %v2259_v10 }
 0xace   :  { %1798 = vmatprep.subr.bf16.mxu1 %v2138_v0  ;;  %1793 = vmatpush3.bf16.msra.mxu0 %v2237_v2 }
 0xacf   :  { %1806 = vmatprep.subr.bf16.mxu0 %v2138_v0 }
 0xb88   :  { %v718_v57 = vpop.f32.mrf.mxu1  ;;  %v760_v58 = vpop.f32.mrf.mxu0 }
 0xb89   :  { %v719_v59 = vadd.f32 %v2272_v11, %v718_v57 }
 0xb8a   :  { %v1772_v60 = vpop.f32.mrf.mxu1  ;;  %v1780_v61 = vpop.f32.mrf.mxu0 }
 0xb8b   :  { %v724_v62 = vmax.f32 %v719_v59, 0.0 }
 0xb8c   :  { %v721_v63 = vpop.f32.mrf.mxu1  ;;  %v763_v3 = vpop.f32.mrf.mxu0 }
 0xb8d   :  { %v725_v5 = vpack.c.bf16 %v724_v62, %v724_v62 }
 0xb8e   :  { %v1773_v8 = vpop.f32.mrf.mxu1  ;;  %v1781_v9 = vpop.f32.mrf.mxu0 }
 0xb8f   :  { %1787 = vmatmul.mubr.msk.bf16.vlgmr.msra.gmra.mxu1 %vm161_vm1, %v725_v5 }
 0xb90   :  { %1799 = vmatpush3.bf16.msra.mxu1 %v2241_v4  ;;  %1802 = vmatprep.mubr.msk.bf16.mxu1 %vm2139_vm0, %v2138_v0 }
 0xb91   :  { %1800 = vmatprep.subr.bf16.mxu1 %v2138_v0 }
 0xb94   :  { %1801 = vmatpush3.bf16.msra.mxu1 %v2244_v6 }
 0xb95   :  { %1814 = vmatprep.subr.bf16.mxu1 %v2138_v0 }
 0xc4f   :  { %v803_v12 = vpop.f32.mrf.mxu1 }
 0xc50   :  { %v804_v13 = vadd.f32 %v803_v12, %v760_v58 }
 0xc51   :  { %v1788_v14 = vpop.f32.mrf.mxu1 }
 0xc52   :  { %v809_v15 = vadd.f32 %v2285_v23, %v804_v13 }
 0xc53   :  { %v806_v16 = vpop.f32.mrf.mxu1 }
 0xc54   :  { %1940 = vtanh.f32 %v809_v15  ;;  %v1598_v19 = vmul.f32 -1.442695, %v809_v15 }
 0xc55   :  { %v1789_v17 = vpop.f32.mrf.mxu1 }
 0xc56   :  { %1942 = vpow2.f32 %v1598_v19 }
 0xc61   :  { %v1941_v18 = vpop.eup %1940 }
 0xc62   :  { %819 = vrot.lane.b32.xlu1 %v1941_v18, %s2133_s23 }
 0xc63   :  { %v1943_v21 = vpop.eup %1942 }
 0xc64   :  { %v813_v22 = vadd.f32 1.0, %v1943_v21 }
 0xc66   :  { %1944 = vrcp.f32 %v813_v22 }
 0xc73   :  { %v1945_v24 = vpop.eup %1944 }
 0xc74   :  { %v817_v27 = vmul.f32 %v1945_v24, %v665_v51 }
 0xcd4   :  { %v820_v25 = vpop.permute.xlu1 %819 }
 0xcd5   :  { %v822_v26 = vmul.f32 %v1945_v24, %v820_v25 }
 0xcd7   :  { %824 = vrot.lane.b32.xlu0 %v822_v26, %s2140_s25 }
 0xd49   :  { %v825_v28 = vpop.permute.xlu0 %824 }
 0xd4a   :  { %v827_v29 = vadd.f32 %v825_v28, %v817_v27 }
 0xd4c   :  { %1946 = vtanh.f32 %v827_v29 }
 0xd59   :  { %v1947_v30 = vpop.eup %1946 }
 0xd5a   :  { %830 = vrot.lane.b32.xlu1 %v1947_v30, %s2133_s23 }
 0xdcc   :  { %v831_v31 = vpop.permute.xlu1 %830 }
 0xdcd   :  { %v2388_v32 = vmul.f32 %v1945_v24, %v831_v31 }
 0xdcf   :  { %v839_v33 = vpack.c.bf16 %v2388_v32, %v2388_v32 }
 0xdd1   :  { %841 = vrot.lane.b32.xlu0 %v839_v33, %s2140_s25 }
 0xe43   :  { %v842_v34 = vpop.permute.xlu0 %841 }
 0xe44   :  { %1795 = vmatmul.mubr.msk.bf16.vlgmr.msra.gmra.mxu0 %vm161_vm1, %v842_v34  ;;  %1803 = vmatmul.mubr.msk.bf16.vlgmr.msra.gmra.mxu1 %vm161_vm1, %v842_v34 }
 0xe45   :  { %1807 = vmatpush3.bf16.msra.mxu0 %v2246_v7  ;;  %1810 = vmatprep.mubr.msk.bf16.mxu0 %vm2139_vm0, %v2138_v0 }
 0xe46   :  { %1808 = vmatprep.subr.bf16.mxu0 %v2138_v0  ;;  %1815 = vmatpush3.bf16.msra.mxu1 %v2235_v1 }
 0xe47   :  { %1816 = vmatprep.subr.bf16.mxu1 %v2138_v0  ;;  %1818 = vmatprep.mubr.msk.bf16.mxu1 %vm2139_vm0, %v2138_v0 }
 0xe49   :  { %1809 = vmatpush3.bf16.msra.mxu0 %v2259_v10 }
 0xe4a   :  { %1822 = vmatprep.subr.bf16.mxu0 %v2138_v0  ;;  %1817 = vmatpush3.bf16.msra.mxu1 %v2237_v2 }
 0xe4b   :  { %1830 = vmatprep.subr.bf16.mxu1 %v2138_v0 }
 0xf04   :  { %v880_v35 = vpop.f32.mrf.mxu0  ;;  %v922_v36 = vpop.f32.mrf.mxu1 }
 0xf05   :  { %v881_v37 = vadd.f32 %v2272_v11, %v880_v35 }
 0xf06   :  { %v1796_v38 = vpop.f32.mrf.mxu0  ;;  %v1804_v39 = vpop.f32.mrf.mxu1 }
 0xf07   :  { %v886_v40 = vmax.f32 %v881_v37, 0.0 }
 0xf08   :  { %v883_v41 = vpop.f32.mrf.mxu0  ;;  %v925_v42 = vpop.f32.mrf.mxu1 }
 0xf09   :  { %v887_v43 = vpack.c.bf16 %v886_v40, %v886_v40 }
 0xf0a   :  { %v1797_v45 = vpop.f32.mrf.mxu0  ;;  %v1805_v46 = vpop.f32.mrf.mxu1 }
 0xf0b   :  { %1811 = vmatmul.mubr.msk.bf16.vlgmr.msra.gmra.mxu0 %vm161_vm1, %v887_v43 }
 0xf0c   :  { %1823 = vmatpush3.bf16.msra.mxu0 %v2241_v4  ;;  %1826 = vmatprep.mubr.msk.bf16.mxu0 %vm2139_vm0, %v2138_v0 }
 0xf0d   :  { %1824 = vmatprep.subr.bf16.mxu0 %v2138_v0 }
 0xf10   :  { %1825 = vmatpush3.bf16.msra.mxu0 %v2244_v6 }
 0xf11   :  { %1838 = vmatprep.subr.bf16.mxu0 %v2138_v0 }
 0xfcb   :  { %v965_v47 = vpop.f32.mrf.mxu0 }
 0xfcc   :  { %v966_v48 = vadd.f32 %v965_v47, %v922_v36 }
 0xfcd   :  { %v1812_v49 = vpop.f32.mrf.mxu0 }
 0xfce   :  { %v971_v50 = vadd.f32 %v2285_v23, %v966_v48 }
 0xfcf   :  { %v968_v51 = vpop.f32.mrf.mxu0 }
 0xfd0   :  { %1948 = vtanh.f32 %v971_v50  ;;  %v1602_v55 = vmul.f32 -1.442695, %v971_v50 }
 0xfd1   :  { %v1813_v52 = vpop.f32.mrf.mxu0 }
 0xfd2   :  { %1950 = vpow2.f32 %v1602_v55 }
 0xfdd   :  { %v1949_v53 = vpop.eup %1948 }
 0xfde   :  { %981 = vrot.lane.b32.xlu1 %v1949_v53, %s2133_s23 }
 0xfdf   :  { %v1951_v56 = vpop.eup %1950 }
 0xfe0   :  { %v975_v57 = vadd.f32 1.0, %v1951_v56 }
 0xfe2   :  { %1952 = vrcp.f32 %v975_v57 }
 0xfef   :  { %v1953_v58 = vpop.eup %1952 }
 0xff0   :  { %v979_v61 = vmul.f32 %v1953_v58, %v827_v29 }
0x1050   :  { %v982_v59 = vpop.permute.xlu1 %981 }
0x1051   :  { %v984_v60 = vmul.f32 %v1953_v58, %v982_v59 }
0x1053   :  { %986 = vrot.lane.b32.xlu0 %v984_v60, %s2140_s25 }
0x10c5   :  { %v987_v62 = vpop.permute.xlu0 %986 }
0x10c6   :  { %v989_v63 = vadd.f32 %v987_v62, %v979_v61 }
0x10c8   :  { %1954 = vtanh.f32 %v989_v63 }
0x10d5   :  { %v1955_v3 = vpop.eup %1954 }
0x10d6   :  { %992 = vrot.lane.b32.xlu1 %v1955_v3, %s2133_s23 }
0x1148   :  { %v993_v5 = vpop.permute.xlu1 %992 }
0x1149   :  { %v2419_v8 = vmul.f32 %v1953_v58, %v993_v5 }
0x114b   :  { %v1001_v9 = vpack.c.bf16 %v2419_v8, %v2419_v8 }
0x114d   :  { %1003 = vrot.lane.b32.xlu0 %v1001_v9, %s2140_s25 }
0x11bf   :  { %v1004_v12 = vpop.permute.xlu0 %1003 }
0x11c0   :  { %1819 = vmatmul.mubr.msk.bf16.vlgmr.msra.gmra.mxu1 %vm161_vm1, %v1004_v12  ;;  %1827 = vmatmul.mubr.msk.bf16.vlgmr.msra.gmra.mxu0 %vm161_vm1, %v1004_v12 }
0x11c1   :  { %1831 = vmatpush3.bf16.msra.mxu1 %v2246_v7  ;;  %1834 = vmatprep.mubr.msk.bf16.mxu1 %vm2139_vm0, %v2138_v0 }
0x11c2   :  { %1832 = vmatprep.subr.bf16.mxu1 %v2138_v0  ;;  %1839 = vmatpush3.bf16.msra.mxu0 %v2235_v1 }
0x11c3   :  { %1840 = vmatprep.subr.bf16.mxu0 %v2138_v0  ;;  %1842 = vmatprep.mubr.msk.bf16.mxu0 %vm2139_vm0, %v2138_v0 }
0x11c5   :  { %1833 = vmatpush3.bf16.msra.mxu1 %v2259_v10 }
0x11c6   :  { %1846 = vmatprep.subr.bf16.mxu1 %v2138_v0  ;;  %1841 = vmatpush3.bf16.msra.mxu0 %v2237_v2 }
0x11c7   :  { %1854 = vmatprep.subr.bf16.mxu0 %v2138_v0 }
0x1280   :  { %v1042_v13 = vpop.f32.mrf.mxu1  ;;  %v1084_v14 = vpop.f32.mrf.mxu0 }
0x1281   :  { %v1043_v15 = vadd.f32 %v2272_v11, %v1042_v13 }
0x1282   :  { %v1820_v16 = vpop.f32.mrf.mxu1  ;;  %v1828_v17 = vpop.f32.mrf.mxu0 }
0x1283   :  { %v1048_v18 = vmax.f32 %v1043_v15, 0.0 }
0x1284   :  { %v1045_v19 = vpop.f32.mrf.mxu1  ;;  %v1087_v21 = vpop.f32.mrf.mxu0 }
0x1285   :  { %v1049_v22 = vpack.c.bf16 %v1048_v18, %v1048_v18 }
0x1286   :  { %v1821_v24 = vpop.f32.mrf.mxu1  ;;  %v1829_v25 = vpop.f32.mrf.mxu0 }
0x1287   :  { %1835 = vmatmul.mubr.msk.bf16.vlgmr.msra.gmra.mxu1 %vm161_vm1, %v1049_v22 }
0x1288   :  { %1847 = vmatpush3.bf16.msra.mxu1 %v2241_v4  ;;  %1850 = vmatprep.mubr.msk.bf16.mxu1 %vm2139_vm0, %v2138_v0 }
0x1289   :  { %1848 = vmatprep.subr.bf16.mxu1 %v2138_v0 }
0x128c   :  { %1849 = vmatpush3.bf16.msra.mxu1 %v2244_v6 }
0x128d   :  { %1862 = vmatprep.subr.bf16.mxu1 %v2138_v0 }
0x1347   :  { %v1127_v26 = vpop.f32.mrf.mxu1 }
0x1348   :  { %v1128_v27 = vadd.f32 %v1127_v26, %v1084_v14 }
0x1349   :  { %v1836_v28 = vpop.f32.mrf.mxu1 }
0x134a   :  { %v1133_v29 = vadd.f32 %v2285_v23, %v1128_v27 }
0x134b   :  { %v1130_v30 = vpop.f32.mrf.mxu1 }
0x134c   :  { %1956 = vtanh.f32 %v1133_v29  ;;  %v1606_v34 = vmul.f32 -1.442695, %v1133_v29 }
0x134d   :  { %v1837_v31 = vpop.f32.mrf.mxu1 }
0x134e   :  { %1958 = vpow2.f32 %v1606_v34 }
0x1359   :  { %v1957_v33 = vpop.eup %1956 }
0x135a   :  { %1143 = vrot.lane.b32.xlu1 %v1957_v33, %s2133_s23 }
0x135b   :  { %v1959_v35 = vpop.eup %1958 }
0x135c   :  { %v1137_v36 = vadd.f32 1.0, %v1959_v35 }
0x135e   :  { %1960 = vrcp.f32 %v1137_v36 }
0x136b   :  { %v1961_v37 = vpop.eup %1960 }
0x136c   :  { %v1141_v40 = vmul.f32 %v1961_v37, %v989_v63 }
0x13cc   :  { %v1144_v38 = vpop.permute.xlu1 %1143 }
0x13cd   :  { %v1146_v39 = vmul.f32 %v1961_v37, %v1144_v38 }
0x13cf   :  { %1148 = vrot.lane.b32.xlu0 %v1146_v39, %s2140_s25 }
0x1441   :  { %v1149_v41 = vpop.permute.xlu0 %1148 }
0x1442   :  { %v1151_v42 = vadd.f32 %v1149_v41, %v1141_v40 }
0x1444   :  { %1962 = vtanh.f32 %v1151_v42 }
0x1451   :  { %v1963_v43 = vpop.eup %1962 }
0x1452   :  { %1154 = vrot.lane.b32.xlu1 %v1963_v43, %s2133_s23 }
0x14c4   :  { %v1155_v45 = vpop.permute.xlu1 %1154 }
0x14c5   :  { %v2450_v46 = vmul.f32 %v1961_v37, %v1155_v45 }
0x14c7   :  { %v1163_v47 = vpack.c.bf16 %v2450_v46, %v2450_v46 }
0x14c9   :  { %1165 = vrot.lane.b32.xlu0 %v1163_v47, %s2140_s25 }
0x153b   :  { %v1166_v48 = vpop.permute.xlu0 %1165 }
0x153c   :  { %1843 = vmatmul.mubr.msk.bf16.vlgmr.msra.gmra.mxu0 %vm161_vm1, %v1166_v48  ;;  %1851 = vmatmul.mubr.msk.bf16.vlgmr.msra.gmra.mxu1 %vm161_vm1, %v1166_v48 }
0x153d   :  { %1855 = vmatpush3.bf16.msra.mxu0 %v2246_v7  ;;  %1858 = vmatprep.mubr.msk.bf16.mxu0 %vm2139_vm0, %v2138_v0 }
0x153e   :  { %1856 = vmatprep.subr.bf16.mxu0 %v2138_v0  ;;  %1863 = vmatpush3.bf16.msra.mxu1 %v2235_v1 }
0x153f   :  { %1864 = vmatprep.subr.bf16.mxu1 %v2138_v0  ;;  %1866 = vmatprep.mubr.msk.bf16.mxu1 %vm2139_vm0, %v2138_v0 }
0x1541   :  { %1857 = vmatpush3.bf16.msra.mxu0 %v2259_v10 }
0x1542   :  { %1870 = vmatprep.subr.bf16.mxu0 %v2138_v0  ;;  %1865 = vmatpush3.bf16.msra.mxu1 %v2237_v2 }
0x1543   :  { %1878 = vmatprep.subr.bf16.mxu1 %v2138_v0 }
0x15fc   :  { %v1204_v49 = vpop.f32.mrf.mxu0  ;;  %v1246_v50 = vpop.f32.mrf.mxu1 }
0x15fd   :  { %v1205_v51 = vadd.f32 %v2272_v11, %v1204_v49 }
0x15fe   :  { %v1844_v52 = vpop.f32.mrf.mxu0  ;;  %v1852_v53 = vpop.f32.mrf.mxu1 }
0x15ff   :  { %v1210_v1 = vmax.f32 %v1205_v51, 0.0 }
0x1600   :  { %v1207_v55 = vpop.f32.mrf.mxu0  ;;  %v1249_v56 = vpop.f32.mrf.mxu1 }
0x1601   :  { %v1211_v57 = vpack.c.bf16 %v1210_v1, %v1210_v1  ;;  %v1915_v1 = vld [vmem:[#allocation12] sm:$0xff]  }
0x1602   :  { %v1845_v58 = vpop.f32.mrf.mxu0  ;;  %v1853_v59 = vpop.f32.mrf.mxu1 }
0x1603   :  { %1859 = vmatmul.mubr.msk.bf16.vlgmr.msra.gmra.mxu0 %vm161_vm1, %v1211_v57 }
0x1604   :  { %1871 = vmatpush3.bf16.msra.mxu0 %v2241_v4  ;;  %1874 = vmatprep.mubr.msk.bf16.mxu0 %vm2139_vm0, %v2138_v0 }
0x1605   :  { %1872 = vmatprep.subr.bf16.mxu0 %v2138_v0 }
0x1608   :  { %1873 = vmatpush3.bf16.msra.mxu0 %v2244_v6 }
0x1609   :  { %1886 = vmatprep.subr.bf16.mxu0 %v2138_v0 }
0x16c3   :  { %v1289_v2 = vpop.f32.mrf.mxu0 }
0x16c4   :  { %v1290_v60 = vadd.f32 %v1289_v2, %v1246_v50  ;;  %v1615_v2 = vld [vmem:[%s2538_s9] ss:$0 sm:$0xff] }
0x16c5   :  { %v1860_v61 = vpop.f32.mrf.mxu0 }
0x16c6   :  { %v1295_v62 = vadd.f32 %v2285_v23, %v1290_v60 }
0x16c7   :  { %v1292_v63 = vpop.f32.mrf.mxu0 }
0x16c8   :  { %1964 = vtanh.f32 %v1295_v62  ;;  %v1610_v4 = vmul.f32 -1.442695, %v1295_v62 }
0x16c9   :  { %v1861_v3 = vpop.f32.mrf.mxu0 }
0x16ca   :  { %1966 = vpow2.f32 %v1610_v4 }
0x16d5   :  { %v1965_v5 = vpop.eup %1964 }
0x16d6   :  { %1305 = vrot.lane.b32.xlu1 %v1965_v5, %s2133_s23 }
0x16d7   :  { %v1967_v9 = vpop.eup %1966 }
0x16d8   :  { %v1299_v12 = vadd.f32 1.0, %v1967_v9 }
0x16da   :  { %1968 = vrcp.f32 %v1299_v12 }
0x16e7   :  { %v1969_v13 = vpop.eup %1968 }
0x16e8   :  { %v1303_v15 = vmul.f32 %v1969_v13, %v1151_v42 }
0x1748   :  { %v1306_v6 = vpop.permute.xlu1 %1305 }
0x1749   :  { %v1308_v14 = vmul.f32 %v1969_v13, %v1306_v6 }
0x174b   :  { %1310 = vrot.lane.b32.xlu0 %v1308_v14, %s2140_s25 }
0x17bd   :  { %v1311_v16 = vpop.permute.xlu0 %1310 }
0x17be   :  { %v1313_v17 = vadd.f32 %v1311_v16, %v1303_v15 }
0x17c0   :  { %1970 = vtanh.f32 %v1313_v17 }
0x17cd   :  { %v1971_v18 = vpop.eup %1970 }
0x17ce   :  { %1316 = vrot.lane.b32.xlu1 %v1971_v18, %s2133_s23 }
0x1840   :  { %v1317_v19 = vpop.permute.xlu1 %1316 }
0x1841   :  { %v1319_v21 = vmul.f32 %v1969_v13, %v1317_v19 }
0x1843   :  { %v1325_v22 = vpack.c.bf16 %v1319_v21, %v1319_v21 }
0x1845   :  { %1327 = vrot.lane.b32.xlu0 %v1325_v22, %s2140_s25 }
0x18b7   :  { %v1328_v24 = vpop.permute.xlu0 %1327 }
0x18b8   :  { %1867 = vmatmul.mubr.msk.bf16.vlgmr.msra.gmra.mxu1 %vm161_vm1, %v1328_v24  ;;  %1875 = vmatmul.mubr.msk.bf16.vlgmr.msra.gmra.mxu0 %vm161_vm1, %v1328_v24 }
0x18b9   :  { %1879 = vmatpush3.bf16.msra.mxu1 %v2246_v7  ;;  %1882 = vmatprep.mubr.msk.bf16.mxu1 %vm2139_vm0, %v2138_v0 }
0x18ba   :  { %1880 = vmatprep.subr.bf16.mxu1 %v2138_v0  ;;  %1890 = vmatprep.mubr.msk.bf16.mxu0 %vm2139_vm0, %v2138_v0 }
0x18bd   :  { %1881 = vmatpush3.bf16.msra.mxu1 %v2259_v10 }
0x1978   :  { %v1366_v25 = vpop.f32.mrf.mxu1  ;;  %v1408_v26 = vpop.f32.mrf.mxu0 }
0x1979   :  { %v1367_v27 = vadd.f32 %v2272_v11, %v1366_v25 }
0x197a   :  { %v1868_v28 = vpop.f32.mrf.mxu1  ;;  %v1876_v29 = vpop.f32.mrf.mxu0 }
0x197b   :  { %v1372_v30 = vmax.f32 %v1367_v27, 0.0 }
0x197c   :  { %v1369_v31 = vpop.f32.mrf.mxu1  ;;  %v1411_v33 = vpop.f32.mrf.mxu0 }
0x197d   :  { %v1373_v7 = vpack.c.bf16 %v1372_v30, %v1372_v30 }
0x197e   :  { %v1869_v34 = vpop.f32.mrf.mxu1  ;;  %v1877_v35 = vpop.f32.mrf.mxu0 }
0x197f   :  { %1883 = vmatmul.mubr.msk.bf16.vlgmr.msra.gmra.mxu1 %vm161_vm1, %v1373_v7 }
0x1a3f   :  { %v1451_v36 = vpop.f32.mrf.mxu1 }
0x1a40   :  { %v1452_v37 = vadd.f32 %v1451_v36, %v1408_v26 }
0x1a41   :  { %v1884_v38 = vpop.f32.mrf.mxu1 }
0x1a42   :  { %v1457_v39 = vadd.f32 %v2285_v23, %v1452_v37 }
0x1a43   :  { %v1454_v10 = vpop.f32.mrf.mxu1 }
0x1a44   :  { %1972 = vtanh.f32 %v1457_v39  ;;  %v1614_v11 = vmul.f32 -1.442695, %v1457_v39 }
0x1a45   :  { %v1885_v40 = vpop.f32.mrf.mxu1 }
0x1a46   :  { %1974 = vpow2.f32 %v1614_v11 }
0x1a51   :  { %v1973_v41 = vpop.eup %1972 }
0x1a52   :  { %1467 = vrot.lane.b32.xlu1 %v1973_v41, %s2133_s23 }
0x1a53   :  { %v1975_v42 = vpop.eup %1974 }
0x1a54   :  { %v1461_v43 = vadd.f32 1.0, %v1975_v42 }
0x1a56   :  { %1976 = vrcp.f32 %v1461_v43 }
0x1a63   :  { %v1977_v45 = vpop.eup %1976 }
0x1a64   :  { %v1465_v23 = vmul.f32 %v1977_v45, %v1313_v17 }
0x1ac4   :  { %v1468_v47 = vpop.permute.xlu1 %1467 }
0x1ac5   :  { %v1470_v48 = vmul.f32 %v1977_v45, %v1468_v47 }
0x1ac7   :  { %1472 = vrot.lane.b32.xlu0 %v1470_v48, %s2140_s25 }
0x1acb   :  { %348 = vrot.lane.b32.xlu0 %v2295_v44, %s2140_s25 }
0x1acf   :  { %673 = vrot.lane.b32.xlu0 %v2357_v54, %s2140_s25 }
0x1ad3   :  { %997 = vrot.lane.b32.xlu0 %v2419_v8, %s2140_s25  ;;  %v1914_v8 = vld [vmem:[#allocation12 + $0x8] sm:$0xff]  }
0x1ad4   :  { %1887 = vmatpush3.bf16.msra.mxu0 %v1914_v8 }
0x1ad5   :  { %1888 = vmatprep.subr.bf16.mxu0 %v2138_v0 }
0x1ad7   :  { %1321 = vrot.lane.b32.xlu0 %v1319_v21, %s2140_s25 }
0x1ad8   :  { %1889 = vmatpush3.bf16.msra.mxu0 %v1915_v1 }
0x1b39   :  { %v1473_v49 = vpop.permute.xlu0 %1472 }
0x1b3a   :  { %v1475_v50 = vadd.f32 %v1473_v49, %v1465_v23 }
0x1b3c   :  { %1978 = vtanh.f32 %v1475_v50 }
0x1b3d   :  { %v349_v51 = vpop.permute.xlu0 %348 }
0x1b3e   :  { %352 = vst.msk [vmem:[#allocation2] sm:$0x3] %vm351_vm2, %v349_v51 }
0x1b41   :  { %v674_v52 = vpop.permute.xlu0 %673 }
0x1b42   :  { %676 = vst.msk [vmem:[#allocation2 + $0x4] sm:$0x3] %vm351_vm2, %v674_v52 }
0x1b45   :  { %v998_v44 = vpop.permute.xlu0 %997 }
0x1b46   :  { %1000 = vst.msk [vmem:[#allocation2 + $0x8] sm:$0x3] %vm351_vm2, %v998_v44 }
0x1b49   :  { %v1979_v54 = vpop.eup %1978  ;;  %v1322_v53 = vpop.permute.xlu0 %1321 }
0x1b4a   :  { %1324 = vst.msk [vmem:[#allocation2 + $0xc] sm:$0x3] %vm351_vm2, %v1322_v53  ;;  %1478 = vrot.lane.b32.xlu1 %v1979_v54, %s2133_s23  ;;  %s2141_s23 = smov [#allocation14]  }
0x1b4b   :  { %s1560_s26 = sshll.u32 %s2141_s23, 4  ;;  %s1561_s26 = int_to_ptr.vmem [resolvable:$true] %s1560_s26 }
0x1b4c   :  { %s2100_s1 = scalar_lea.vmem %s1561_s26, 256  ;;  %p2105_p3 = scmp.lt.s32.totalorder %s1561_s26, %s1561_s26 }
0x1b4d   :  { %p2101_p2 = scmp.ne.s32.totalorder %s1561_s26, %s2100_s1  ;;  %p2106_p4 = scmp.lt.s32.totalorder %s2100_s1, %s2100_s1 }
0x1b4e   :  { %511 = vrot.lane.b32.xlu1 %v2326_v20, %s2140_s25 }
0x1b4f   :  { %p2107_p5 = por %p2106_p4, %p2105_p3 }
0x1b51   :  { %p2108_p6 = pnand %p2107_p5, %p2101_p2 }
0x1b52   :  { %835 = vrot.lane.b32.xlu1 %v2388_v32, %s2140_s25 }
0x1b56   :  { %1159 = vrot.lane.b32.xlu1 %v2450_v46, %s2140_s25 }
0x1bbc   :  { %v1479_v55 = vpop.permute.xlu1 %1478 }
0x1bbd   :  { %v1481_v56 = vmul.f32 %v1977_v45, %v1479_v55 }
0x1bbf   :  { %1483 = vrot.lane.b32.xlu1 %v1481_v56, %s2140_s25 }
0x1bc0   :  { %v512_v57 = vpop.permute.xlu1 %511 }
0x1bc1   :  { %514 = vst.msk [vmem:[#allocation2 + $0x2] sm:$0x3] %vm351_vm2, %v512_v57 }
0x1bc4   :  { %v836_v20 = vpop.permute.xlu1 %835 }
0x1bc5   :  { %838 = vst.msk [vmem:[#allocation2 + $0x6] sm:$0x3] %vm351_vm2, %v836_v20 }
0x1bc8   :  { %v1160_v32 = vpop.permute.xlu1 %1159 }
0x1bc9   :  { %1162 = vst.msk [vmem:[#allocation2 + $0xa] sm:$0x3] %vm351_vm2, %v1160_v32 }
0x1bcc   :  { %v1487_v58 = vld [vmem:[#allocation2] sm:$0xff] }
0x1c31   :  { %v1484_v46 = vpop.permute.xlu1 %1483 }
0x1c32   :  { %1486 = vst.msk [vmem:[#allocation2 + $0xe] sm:$0x3] %vm351_vm2, %v1484_v46 }
0x1c39   :  { %v1488_v59 = vld [vmem:[#allocation2 + $0x8] sm:$0xff] }
0x1c3a   :  { %v1489_v0 = vpack.c.bf16 %v1488_v59, %v1487_v58 }
0x1c3c   :  { %1891 = vmatmul.mubr.msk.bf16.vlgmr.msra.gmra.mxu0 %vm161_vm1, %v1489_v0 }
0x1cfc   :  { %v1546_v60 = vpop.f32.mrf.mxu0 }
0x1cfd   :  { %v1547_v61 = vadd.f32 %v1615_v2, %v1546_v60 }
0x1cfe   :  { %v1892_v62 = vpop.f32.mrf.mxu0 }
0x1cff   :  { %1553 = vst.msk [vmem:[#allocation14] sm:$0xff] %vm161_vm1, %v1547_v61 }
0x1d00   :  { %v1549_v63 = vpop.f32.mrf.mxu0 }
0x1d01   :  { %v1550_v3 = vadd.f32 %v1615_v2, %v1549_v63 }
0x1d02   :  { %v1893_v5 = vpop.f32.mrf.mxu0 }
0x1d03   :  { %1554 = vst.msk [vmem:[#allocation14 + $0x8] sm:$0xff] %vm161_vm1, %v1550_v3 }
0x1d04   :  { %2111 = shalt.err (!%p2108_p6)
}
0x1d05   :  { %s2142_s9 = smov 128   ;;  %s2143_s27 = smov 8  }
0x1d06   :  { %1566 = dma.vmem_to_hbm [thread:$0]  %s1561_s26, 256, %s2539_s10, [#allocation5], %s2142_s9, %s2142_s9, %s2143_s27  }
0x1d07   :  { %2128 = dma.done.wait [#allocation5], 256  }
0x1d08   :  { %2129 = vsyncadd [#allocation5], 4294967040 }
0x1d09   :  { %1570 = vsyncpa [#allocation4], 1 }
0x1d0a   :  { %1571 = vsyncpa [#allocation7], 1 }
0x1d0b   :  { %1572 = vsyncpa [#allocation10], 1 }
0x1d0c   :  { %1573 = vsyncpa [#allocation13], 1 }
0x1d0d   :  { %1574 = vsyncpa [#allocation5], 1 }

</bundles_post_ra>
